<compile_context>
chip_gen: v6e
topology: v6e:2x2x1
jax: 0.10.0
libtpu: 0.0.40
codegen_flags: <defaults>
</compile_context>

<pallas_src>
import numpy as np
import jax
import jax.numpy as jnp
from jax.experimental import pallas as pl
from jax.experimental.pallas import tpu as pltpu


def _temporal_edge_preprocess_kernel(efeat_ref, ets_ref, sts_ref,
                                     w_time_ref, b_time_ref, out_ref):
    """Compute one (TILE_E, De+Dt) output tile.

    efeat_ref : (TILE_E, De)   raw edge features
    ets_ref   : (TILE_E, 1)    edge timestamps
    sts_ref   : (TILE_E, 1)    gathered source-node timestamps
    w_time_ref: (1, Dt)        time-encoder Linear(1, Dt) weight (row vector)
    b_time_ref: (1, Dt)        time-encoder bias
    out_ref   : (TILE_E, De+Dt)
    """
    de = efeat_ref.shape[1]                                     # static at trace time
    tdiff = ets_ref[...] - sts_ref[...]                         # (TILE_E, 1)
    # K=1 "matmul" -> VPU broadcast multiply (review feedback: don't waste an MXU pass).
    te = jnp.cos(tdiff * w_time_ref[...] + b_time_ref[...])     # (TILE_E, Dt)
    out_ref[:, :de] = efeat_ref[...]
    out_ref[:, de:] = te


def temporal_edge_preprocess(edge_feats, edge_ts, node_ts, src,
                             w_time, b_time, *, tile_e=128):
    """efeat = concat([edge_feats, cos(w_time*(edge_ts - node_ts[src]) + b_time)], axis=1)."""
    E, De = edge_feats.shape
    Dt = w_time.shape[1]

    # Host/XLA glue: the only graph-dependent op is this O(E)-scalar index gather.
    src_ts = jnp.take(node_ts, src, axis=0).astype(jnp.float32)[:, None]   # (E, 1)
    ets = edge_ts.astype(jnp.float32)[:, None]                             # (E, 1)
    efeat = edge_feats.astype(jnp.float32)

    # Tile over the edge axis. TILE_E must be a multiple of 8 (sublane); pad E up.
    tile_e = int(min(tile_e, ((E + 7) // 8) * 8))
    tile_e = max(8, ((tile_e + 7) // 8) * 8)
    e_pad = ((E + tile_e - 1) // tile_e) * tile_e
    if e_pad != E:
        pad = ((0, e_pad - E), (0, 0))
        efeat = jnp.pad(efeat, pad)
        ets = jnp.pad(ets, pad)
        src_ts = jnp.pad(src_ts, pad)

    grid = (e_pad // tile_e,)

    out = pl.pallas_call(
        _temporal_edge_preprocess_kernel,
        out_shape=jax.ShapeDtypeStruct((e_pad, De + Dt), jnp.float32),
        grid_spec=pltpu.PrefetchScalarGridSpec(
            num_scalar_prefetch=0,
            grid=grid,
            in_specs=[
                pl.BlockSpec((tile_e, De), lambda i: (i, 0)),     # edge feature tile
                pl.BlockSpec((tile_e, 1), lambda i: (i, 0)),      # edge timestamps
                pl.BlockSpec((tile_e, 1), lambda i: (i, 0)),      # gathered src timestamps
                pl.BlockSpec((1, Dt), lambda i: (0, 0)),          # time-encoder weight (replicated)
                pl.BlockSpec((1, Dt), lambda i: (0, 0)),          # time-encoder bias   (replicated)
            ],
            out_specs=pl.BlockSpec((tile_e, De + Dt), lambda i: (i, 0)),
        ),
        compiler_params=pltpu.CompilerParams(
            dimension_semantics=("parallel",)),                   # v7x megacore: split edge tiles
    )(efeat, ets, src_ts,
      w_time.astype(jnp.float32), b_time.astype(jnp.float32))

    return out[:E]


def make_time_encoder_params(time_dim):
    """Standard TGN TimeEncode: Linear(1, Dt) with log-spaced frequencies, zero bias."""
    w = jnp.asarray(1.0 / 10.0 ** np.linspace(0, 9, time_dim), jnp.float32)[None, :]  # (1, Dt)
    b = jnp.zeros((1, time_dim), jnp.float32)
    return w, b


def reference_forward(edge_feats, edge_ts, node_ts, src, w_time, b_time):
    """Pure-JAX mirror of TemporalEdgePreprocess.forward (for correctness check)."""
    tdiff = (edge_ts - node_ts[src]).astype(jnp.float32)[:, None]
    te = jnp.cos(tdiff @ w_time + b_time)
    return jnp.concatenate([edge_feats.astype(jnp.float32), te], axis=1)


if __name__ == "__main__":
    # Small graph shapes consistent with the module.
    N, E = 64, 512        # nodes, edges
    De, Dt = 16, 16       # raw edge feature dim, temporal_encoder dimension

    key = jax.random.PRNGKey(0)
    k1, k2, k3, k4 = jax.random.split(key, 4)
    edge_feats = jax.random.normal(k1, (E, De), dtype=jnp.float32)
    node_ts = jax.random.uniform(k2, (N,), dtype=jnp.float32, maxval=10.0)
    edge_ts = jax.random.uniform(k3, (E,), dtype=jnp.float32, minval=10.0, maxval=20.0)
    src = jax.random.randint(k4, (E,), 0, N)

    w_time, b_time = make_time_encoder_params(Dt)

    out = temporal_edge_preprocess(edge_feats, edge_ts, node_ts, src,
                                   w_time, b_time, tile_e=128)
    out = jax.block_until_ready(out)

    ref = reference_forward(edge_feats, edge_ts, node_ts, src, w_time, b_time)
    np.testing.assert_allclose(np.asarray(out), np.asarray(ref), rtol=1e-4, atol=1e-4)
    print("KERNEL_OK")
</pallas_src>

<mosaic_0001>
module attributes {stable_mosaic.version = 11 : i64} {
  func.func @_temporal_edge_preprocess_kernel(%arg0: i32, %arg1: memref<128x16xf32, #tpu.memory_space<vmem>>, %arg2: memref<128x1xf32, #tpu.memory_space<vmem>>, %arg3: memref<128x1xf32, #tpu.memory_space<vmem>>, %arg4: memref<1x16xf32, #tpu.memory_space<vmem>>, %arg5: memref<1x16xf32, #tpu.memory_space<vmem>>, %arg6: memref<128x32xf32, #tpu.memory_space<vmem>>) attributes {dimension_semantics = [#tpu.dimension_semantics<parallel>], iteration_bounds = array<i64: 4>, scalar_prefetch = 0 : i64, scratch_operands = 0 : i64, tpu.core_type = #tpu.core_type<tc>, window_params = [{transform_indices = @transform_0, window_bounds = array<i64: 128, 16>}, {transform_indices = @transform_1, window_bounds = array<i64: 128, 1>}, {transform_indices = @transform_2, window_bounds = array<i64: 128, 1>}, {pipeline_mode = #tpu.pipeline_mode<synchronous>, transform_indices = @transform_3, window_bounds = array<i64: 1, 16>}, {pipeline_mode = #tpu.pipeline_mode<synchronous>, transform_indices = @transform_4, window_bounds = array<i64: 1, 16>}, {transform_indices = @transform_5, window_bounds = array<i64: 128, 32>}]} {
    %c0 = arith.constant 0 : index
    %c0_0 = arith.constant 0 : index
    %0 = vector.load %arg2[%c0, %c0_0] : memref<128x1xf32, #tpu.memory_space<vmem>>, vector<128x1xf32>
    %c0_1 = arith.constant 0 : index
    %c0_2 = arith.constant 0 : index
    %1 = vector.load %arg3[%c0_1, %c0_2] : memref<128x1xf32, #tpu.memory_space<vmem>>, vector<128x1xf32>
    %2 = arith.subf %0, %1 : vector<128x1xf32>
    %c0_3 = arith.constant 0 : index
    %c0_4 = arith.constant 0 : index
    %3 = vector.load %arg4[%c0_3, %c0_4] : memref<1x16xf32, #tpu.memory_space<vmem>>, vector<1x16xf32>
    %4 = vector.broadcast %2 : vector<128x1xf32> to vector<128x16xf32>
    %5 = vector.broadcast %3 : vector<1x16xf32> to vector<128x16xf32>
    %6 = arith.mulf %4, %5 : vector<128x16xf32>
    %c0_5 = arith.constant 0 : index
    %c0_6 = arith.constant 0 : index
    %7 = vector.load %arg5[%c0_5, %c0_6] : memref<1x16xf32, #tpu.memory_space<vmem>>, vector<1x16xf32>
    %8 = vector.broadcast %7 : vector<1x16xf32> to vector<128x16xf32>
    %9 = arith.addf %6, %8 : vector<128x16xf32>
    %10 = math.cos %9 : vector<128x16xf32>
    %c0_7 = arith.constant 0 : index
    %c0_8 = arith.constant 0 : index
    %11 = vector.load %arg1[%c0_7, %c0_8] : memref<128x16xf32, #tpu.memory_space<vmem>>, vector<128x16xf32>
    %c0_9 = arith.constant 0 : index
    %c0_10 = arith.constant 0 : index
    %12 = vector.load %arg6[%c0_9, %c0_10] : memref<128x32xf32, #tpu.memory_space<vmem>>, vector<128x16xf32>
    tpu.vector_store %arg6[%c0_9, %c0_10], %11 {strides = array<i32>} : memref<128x32xf32, #tpu.memory_space<vmem>>, vector<128x16xf32>,
    %c0_11 = arith.constant 0 : index
    %c16 = arith.constant 16 : index
    %13 = vector.load %arg6[%c0_11, %c16] : memref<128x32xf32, #tpu.memory_space<vmem>>, vector<128x16xf32>
    tpu.vector_store %arg6[%c0_11, %c16], %10 {strides = array<i32>} : memref<128x32xf32, #tpu.memory_space<vmem>>, vector<128x16xf32>,
    return
  }
  func.func @transform_0(%arg0: i32) -> (i32, i32) {
    %c0_i32 = arith.constant 0 : i32
    %c0_i32_0 = arith.constant 0 : i32
    return %arg0, %c0_i32 : i32, i32
  }
  func.func @transform_1(%arg0: i32) -> (i32, i32) {
    %c0_i32 = arith.constant 0 : i32
    %c0_i32_0 = arith.constant 0 : i32
    return %arg0, %c0_i32 : i32, i32
  }
  func.func @transform_2(%arg0: i32) -> (i32, i32) {
    %c0_i32 = arith.constant 0 : i32
    %c0_i32_0 = arith.constant 0 : i32
    return %arg0, %c0_i32 : i32, i32
  }
  func.func @transform_3(%arg0: i32) -> (i32, i32) {
    %c0_i32 = arith.constant 0 : i32
    %c0_i32_0 = arith.constant 0 : i32
    %c0_i32_1 = arith.constant 0 : i32
    return %c0_i32, %c0_i32_0 : i32, i32
  }
  func.func @transform_4(%arg0: i32) -> (i32, i32) {
    %c0_i32 = arith.constant 0 : i32
    %c0_i32_0 = arith.constant 0 : i32
    %c0_i32_1 = arith.constant 0 : i32
    return %c0_i32, %c0_i32_0 : i32, i32
  }
  func.func @transform_5(%arg0: i32) -> (i32, i32) {
    %c0_i32 = arith.constant 0 : i32
    %c0_i32_0 = arith.constant 0 : i32
    return %arg0, %c0_i32 : i32, i32
  }
}

</mosaic_0001>

<bundles_post_ra>
// kernel: tpu_custom_call.1
= control target key start
LH: loop header
LB: loop body
LE: loop exit
PB: predicated region body
PF: predicated region fallthrough
CT: control target
= control target key end

     0   :  { %s2561_s18 = smov 0   ;;  %s4696_s0 = inlined_call_operand.vmem [shape: f32[512,16], index: 0, kind: input, shape index: {}]   ;;  %s4697_s1 = inlined_call_operand.vmem [shape: f32[512,1], index: 1, kind: input, shape index: {}]   ;;  %s4698_s2 = inlined_call_operand.vmem [shape: f32[512,1], index: 2, kind: input, shape index: {}]   ;;  %s4699_s3 = inlined_call_operand.vmem [shape: f32[1,16], index: 3, kind: input, shape index: {}]   ;;  %s4700_s4 = inlined_call_operand.vmem [shape: f32[1,16], index: 4, kind: input, shape index: {}]   ;;  %s4701_s5 = inlined_call_operand.vmem [shape: f32[512,32], index: 5, kind: output, shape index: {}]  }
   0x1 LB: > { %s2288_s19 = sadd.s32 4294967295, %s2521_s18   ;;  %p2292_p0 = scmp.ge.s32.totalorder %s2521_s18, 1  ;;  %s2521_s18 = sphi %s2561_s18, %s15_s18  }
   0x2   : > { %p210_p1 = scmp.lt.s32.totalorder %s2521_s18, 5 }
   0x4   : > { %p211_p2 = pnand %p2292_p0, %p210_p1 }
   0x6   : > { %214 = sbr.rel (%p211_p2) target bundleno = 708 (0x2c4), region = 40 }
   0xb   : > { %s2293_s20 = sshll.u32 %s2288_s19, 4  ;;  %v2523_v0 = vmov 0   ;;  %v2618_v51 = vld [vmem:[%s4699_s3] ss:$0 sm:$0xff]  ;;  %s2530_s7 = smov 16  }
   0xc   : > { %2450 = vset.pattern.permute.xlu1 %v2523_v0  ;;  %2449 = vset.pattern.permute.xlu0 %v2523_v0  ;;  %p249_p3 = scmp.lt.s32.totalorder %s2293_s20, 63  ;;  %v2625_v56 = vld [vmem:[%s4700_s4] ss:$0 sm:$0xff] }
   0xe   : > { %s4797_s20 = smov (!%p249_p3, %s2293_s20), 63 }
   0xf   : > { %s2569_s21 = sshll.u32 %s4797_s20, 3 }
  0x10   : > { %s2575_s24 = scalar_lea.vmem %s4697_s1, %s2569_s21  ;;  %s2581_s27 = scalar_lea.vmem %s4698_s2, %s2569_s21 }
  0x11   : > { %v274_v1 = vld [vmem:[%s2575_s24 + $0x10] sm:$0xff]  ;;  %v272_v3 = vld [vmem:[%s2575_s24] sm:$0xff]  ;;  %v275_v6 = vld [vmem:[%s2575_s24 + $0x18] sm:$0xff]  ;;  %s4505_s10 = scalar_lea.vmem %s4696_s0, %s2569_s21  ;;  %s4560_s13 = scalar_lea.vmem %s4701_s5, %s2569_s21 }
  0x12   : > { %v290_v2 = vld [vmem:[%s2581_s27 + $0x10] sm:$0xff]  ;;  %v288_v5 = vld [vmem:[%s2581_s27] sm:$0xff]  ;;  %v291_v7 = vld [vmem:[%s2581_s27 + $0x18] sm:$0xff] }
  0x13   : > { %v306_v4 = vsub.f32 %v274_v1, %v290_v2  ;;  %v304_v8 = vsub.f32 %v272_v3, %v288_v5  ;;  %v273_v9 = vld [vmem:[%s2575_s24 + $0x8] sm:$0xff]  ;;  %v307_v11 = vsub.f32 %v275_v6, %v291_v7  ;;  %v276_v15 = vld [vmem:[%s2575_s24 + $0x20] sm:$0xff]  ;;  %v279_v19 = vld [vmem:[%s2575_s24 + $0x38] sm:$0xff] }
  0x14   : > { %v289_v10 = vld [vmem:[%s2581_s27 + $0x8] sm:$0xff]  ;;  %v292_v16 = vld [vmem:[%s2581_s27 + $0x20] sm:$0xff]  ;;  %v295_v20 = vld [vmem:[%s2581_s27 + $0x38] sm:$0xff] }
  0x15   : > { %333 = vperm.xlu1 %2450, %v306_v4   ;;  %323 = vperm.xlu0 %2449, %v304_v8   ;;  %v305_v12 = vsub.f32 %v273_v9, %v289_v10  ;;  %v277_v13 = vld [vmem:[%s2575_s24 + $0x28] sm:$0xff]  ;;  %v308_v18 = vsub.f32 %v276_v15, %v292_v16  ;;  %v278_v21 = vld [vmem:[%s2575_s24 + $0x30] sm:$0xff]  ;;  %v311_v23 = vsub.f32 %v279_v19, %v295_v20  ;;  %v280_v27 = vld [vmem:[%s2575_s24 + $0x40] sm:$0xff] }
  0x16   : > { %v293_v14 = vld [vmem:[%s2581_s27 + $0x28] sm:$0xff]  ;;  %v294_v22 = vld [vmem:[%s2581_s27 + $0x30] sm:$0xff]  ;;  %v296_v28 = vld [vmem:[%s2581_s27 + $0x40] sm:$0xff] }
  0x17   : > { %v309_v17 = vsub.f32 %v277_v13, %v293_v14  ;;  %v310_v24 = vsub.f32 %v278_v21, %v294_v22  ;;  %v281_v25 = vld [vmem:[%s2575_s24 + $0x48] sm:$0xff]  ;;  %v312_v30 = vsub.f32 %v280_v27, %v296_v28  ;;  %v283_v31 = vld [vmem:[%s2575_s24 + $0x58] sm:$0xff]  ;;  %v282_v33 = vld [vmem:[%s2575_s24 + $0x50] sm:$0xff] }
  0x18   : > { %v297_v26 = vld [vmem:[%s2581_s27 + $0x48] sm:$0xff]  ;;  %v299_v32 = vld [vmem:[%s2581_s27 + $0x58] sm:$0xff]  ;;  %v298_v34 = vld [vmem:[%s2581_s27 + $0x50] sm:$0xff] }
  0x19   : > { %338 = vperm.xlu1 %2450, %v307_v11   ;;  %328 = vperm.xlu0 %2449, %v305_v12   ;;  %v313_v29 = vsub.f32 %v281_v25, %v297_v26  ;;  %v315_v35 = vsub.f32 %v283_v31, %v299_v32  ;;  %v314_v36 = vsub.f32 %v282_v33, %v298_v34  ;;  %v285_v37 = vld [vmem:[%s2575_s24 + $0x68] sm:$0xff]  ;;  %v284_v39 = vld [vmem:[%s2575_s24 + $0x60] sm:$0xff]  ;;  %v287_v43 = vld [vmem:[%s2575_s24 + $0x78] sm:$0xff] }
  0x1a   : > { %v301_v38 = vld [vmem:[%s2581_s27 + $0x68] sm:$0xff]  ;;  %v300_v40 = vld [vmem:[%s2581_s27 + $0x60] sm:$0xff]  ;;  %v303_v44 = vld [vmem:[%s2581_s27 + $0x78] sm:$0xff] }
  0x1b   : > { %v317_v41 = vsub.f32 %v285_v37, %v301_v38  ;;  %v316_v42 = vsub.f32 %v284_v39, %v300_v40  ;;  %v286_v45 = vld [vmem:[%s2575_s24 + $0x70] sm:$0xff]  ;;  %v319_v47 = vsub.f32 %v287_v43, %v303_v44 }
  0x1c   : > { %v302_v46 = vld [vmem:[%s2581_s27 + $0x70] sm:$0xff] }
  0x1d   : > { %348 = vperm.xlu1 %2450, %v309_v17   ;;  %343 = vperm.xlu0 %2449, %v308_v18   ;;  %v318_v48 = vsub.f32 %v286_v45, %v302_v46 }
  0x21   : > { %358 = vperm.xlu1 %2450, %v311_v23   ;;  %353 = vperm.xlu0 %2449, %v310_v24  }
  0x25   : > { %368 = vperm.xlu1 %2450, %v313_v29   ;;  %363 = vperm.xlu0 %2449, %v312_v30  }
  0x29   : > { %378 = vperm.xlu1 %2450, %v315_v35   ;;  %373 = vperm.xlu0 %2449, %v314_v36  }
  0x2d   : > { %388 = vperm.xlu1 %2450, %v317_v41   ;;  %383 = vperm.xlu0 %2449, %v316_v42  }
  0x31   : > { %398 = vperm.xlu1 %2450, %v319_v47   ;;  %393 = vperm.xlu0 %2449, %v318_v48  }
  0x90   : > { %v334_v49 = vpop.permute.xlu1 %333  ;;  %v324_v50 = vpop.permute.xlu0 %323 }
  0x91   : > { %v409_v54 = vmul.f32 %v2618_v51, %v334_v49  ;;  %v407_v55 = vmul.f32 %v2618_v51, %v324_v50 }
  0x93   : > { %v2630_v61 = vadd.f32 %v2625_v56, %v409_v54  ;;  %v2633_v62 = vadd.f32 %v2625_v56, %v407_v55 }
  0x94   : > { %v339_v52 = vpop.permute.xlu1 %338  ;;  %v329_v53 = vpop.permute.xlu0 %328 }
  0x95   : > { %v410_v0 = vmul.f32 %v2618_v51, %v339_v52  ;;  %v408_v1 = vmul.f32 %v2618_v51, %v329_v53  ;;  %v655_v6 = vand.u32 2139095040, %v2630_v61  ;;  %v449_v7 = vand.u32 2139095040, %v2633_v62 }
  0x96   : > { %v4703_v44 = vand.u32 2147483647, %v2633_v62  ;;  %v4702_v54 = vand.u32 2147483647, %v2630_v61 }
  0x97   : > { %v2647_v8 = vadd.f32 %v2625_v56, %v410_v0  ;;  %v2650_v9 = vadd.f32 %v2625_v56, %v408_v1  ;;  %v656_v13 = vshrl.u32 %v655_v6, 23  ;;  %v450_v14 = vshrl.u32 %v449_v7, 23 }
  0x98   : > { %v349_v57 = vpop.permute.xlu1 %348  ;;  %v344_v59 = vpop.permute.xlu0 %343  ;;  %v453_v53 = vand.u32 8388607, %v4703_v44  ;;  %v2695_v6 = vand.u32 8388607, %v4702_v54 }
  0x99   : > { %v412_v58 = vmul.f32 %v2618_v51, %v349_v57  ;;  %v411_v60 = vmul.f32 %v2618_v51, %v344_v59  ;;  %v758_v15 = vand.u32 2139095040, %v2647_v8  ;;  %v552_v16 = vand.u32 2139095040, %v2650_v9 }
  0x9a   : > { %v2311_v21 = vadd.s32 4294967169, %v656_v13  ;;  %v2303_v22 = vadd.s32 4294967169, %v450_v14 }
  0x9b   : > { %v2636_v63 = vadd.f32 %v2625_v56, %v412_v58  ;;  %v2641_v2 = vadd.f32 %v2625_v56, %v411_v60  ;;  %v759_v25 = vshrl.u32 %v758_v15, 23  ;;  %v553_v26 = vshrl.u32 %v552_v16, 23 }
  0x9c   : > { %v359_v3 = vpop.permute.xlu1 %358  ;;  %v354_v5 = vpop.permute.xlu0 %353  ;;  %v662_v32 = vadd.s32 1, %v2311_v21  ;;  %v456_v33 = vadd.s32 1, %v2303_v22 }
  0x9d   : > { %v414_v4 = vmul.f32 %v2618_v51, %v359_v3  ;;  %v413_v18 = vmul.f32 %v2618_v51, %v354_v5  ;;  %v964_v28 = vand.u32 2139095040, %v2636_v63  ;;  %v2315_v35 = vadd.s32 4294967169, %v759_v25 }
  0x9e   : > { %v2307_v36 = vadd.s32 4294967169, %v553_v26  ;;  %v861_v40 = vand.u32 2139095040, %v2641_v2  ;;  %vm663_vm0 = vcmp.gt.s32.totalorder %v662_v32, 0  ;;  %vm457_vm1 = vcmp.gt.s32.totalorder %v456_v33, 0 }
  0x9f   : > { %v2653_v11 = vadd.f32 %v2625_v56, %v414_v4  ;;  %v2661_v23 = vadd.f32 %v2625_v56, %v413_v18  ;;  %v965_v39 = vshrl.u32 %v964_v28, 23  ;;  %v765_v45 = vadd.s32 1, %v2315_v35 }
  0xa0   : > { %v369_v10 = vpop.permute.xlu1 %368  ;;  %v364_v12 = vpop.permute.xlu0 %363  ;;  %v559_v46 = vadd.s32 1, %v2307_v36  ;;  %v862_v48 = vshrl.u32 %v861_v40, 23  ;;  %v458_v52 = vsel %vm457_vm1, %v456_v33, 0  ;;  %v664_v55 = vsel %vm663_vm0, %v662_v32, 0 }
  0xa1   : > { %v416_v19 = vmul.f32 %v2618_v51, %v369_v10  ;;  %v415_v20 = vmul.f32 %v2618_v51, %v364_v12  ;;  %v2323_v47 = vadd.s32 4294967169, %v965_v39  ;;  %v1170_v49 = vand.u32 2139095040, %v2653_v11 }
  0xa2   : > { %vm766_vm2 = vcmp.gt.s32.totalorder %v765_v45, 0  ;;  %vm560_vm3 = vcmp.gt.s32.totalorder %v559_v46, 0  ;;  %v2319_v59 = vadd.s32 4294967169, %v862_v48  ;;  %v460_v1 = vand.u32 31, %v458_v52 }
  0xa3   : > { %v2664_v24 = vadd.f32 %v2625_v56, %v416_v19  ;;  %v2668_v30 = vadd.f32 %v2625_v56, %v415_v20  ;;  %v971_v58 = vadd.s32 1, %v2323_v47  ;;  %v1171_v60 = vshrl.u32 %v1170_v49, 23 }
  0xa4   : > { %v379_v17 = vpop.permute.xlu1 %378  ;;  %v374_v27 = vpop.permute.xlu0 %373  ;;  %v454_v5 = vor.u32 8388608, %v453_v53  ;;  %v2697_v7 = vand.u32 31, %v664_v55  ;;  %v767_v10 = vsel %vm766_vm2, %v765_v45, 0  ;;  %v561_v12 = vsel %vm560_vm3, %v559_v46, 0 }
  0xa5   : > { %4734 = vst [vmem:[#allocation2_spill] sm:$0xff] %v2664_v24  ;;  %4735 = vst [vmem:[#allocation3_spill] sm:$0xff] %v2668_v30  ;;  %v418_v31 = vmul.f32 %v2618_v51, %v379_v17  ;;  %v417_v34 = vmul.f32 %v2618_v51, %v374_v27  ;;  %vm972_vm4 = vcmp.gt.s32.totalorder %v971_v58, 0  ;;  %v868_v13 = vadd.s32 1, %v2319_v59 }
  0xa6   : > { %v2331_v14 = vadd.s32 4294967169, %v1171_v60  ;;  %v461_v16 = vsub.s32 32, %v460_v1  ;;  %v2703_v18 = vand.u32 31, %v767_v10  ;;  %v2705_v19 = vand.u32 31, %v561_v12 }
  0xa7   : > { %v2673_v37 = vadd.f32 %v2625_v56, %v418_v31  ;;  %v2678_v41 = vadd.f32 %v2625_v56, %v417_v34  ;;  %v2707_v20 = vshll.u32 %v454_v5, 8  ;;  %v2710_v22 = vshrl.u32 %v664_v55, 5 }
  0xa8   : > { %v389_v29 = vpop.permute.xlu1 %388  ;;  %v384_v42 = vpop.permute.xlu0 %383  ;;  %v973_v25 = vsel %vm972_vm4, %v971_v58, 0  ;;  %v1067_v26 = vand.u32 2139095040, %v2661_v23  ;;  %v2717_v28 = vsub.s32 32, %v2697_v7  ;;  %vm869_vm5 = vcmp.gt.s32.totalorder %v868_v13, 0 }
  0xa9   : > { %4736 = vst [vmem:[#allocation4_spill] sm:$0xff] %v2673_v37  ;;  %v420_v38 = vmul.f32 %v2618_v51, %v389_v29  ;;  %4737 = vst [vmem:[#allocation5_spill] sm:$0xff] %v2678_v41  ;;  %v419_v50 = vmul.f32 %v2618_v51, %v384_v42  ;;  %v1177_v29 = vadd.s32 1, %v2331_v14  ;;  %v2721_v31 = vshrl.u32 %v767_v10, 5 }
  0xaa   : > { %v2723_v32 = vshrl.u32 %v561_v12, 5  ;;  %v1376_v33 = vand.u32 2139095040, %v2664_v24  ;;  %v4719_v34 = vmov 2475754826   ;;  %v2728_v36 = vsub.s32 32, %v2703_v18 }
  0xab   : > { %v2681_v43 = vadd.f32 %v2625_v56, %v420_v38  ;;  %v2690_v0 = vadd.f32 %v2625_v56, %v419_v50  ;;  %v464_v35 = vshrl.u32 %v4719_v34, %v461_v16  ;;  %v2733_v38 = vshrl.u32 %v973_v25, 5 }
  0xac   : > { %v399_v57 = vpop.permute.xlu1 %398  ;;  %v394_v4 = vpop.permute.xlu0 %393  ;;  %v4710_v39 = vmov 2131351028   ;;  %v2736_v42 = vand.u32 31, %v973_v25  ;;  %v870_v45 = vsel %vm869_vm5, %v868_v13, 0  ;;  %v1068_v46 = vshrl.u32 %v1067_v26, 23 }
  0xad   : > { %4738 = vst [vmem:[#allocation6_spill] sm:$0xff] %v2681_v43  ;;  %v422_v3 = vmul.f32 %v2618_v51, %v399_v57  ;;  %v421_v17 = vmul.f32 %v2618_v51, %v394_v4  ;;  %v2719_v51 = vshrl.u32 %v458_v52, 5  ;;  %v467_v40 = vshrl.u32 %v4710_v39, %v461_v16 }
  0xae   : > { %v4713_v47 = vmov 683565275   ;;  %vm1178_vm6 = vcmp.gt.s32.totalorder %v1177_v29, 0  ;;  %v466_v49 = vshll.u32 %v4719_v34, %v460_v1  ;;  %v469_v50 = vshll.u32 %v4710_v39, %v460_v1 }
  0xaf   : > { %v2700_v15 = vadd.f32 %v2625_v56, %v422_v3  ;;  %v2714_v27 = vadd.f32 %v2625_v56, %v421_v17  ;;  %v2731_v56 = vsub.s32 32, %v2705_v19  ;;  %v463_v48 = vshll.u32 %v4713_v47, %v460_v1 }
  0xb0   : > { %v4708_v52 = vmov 2102212464   ;;  %v1377_v55 = vshrl.u32 %v1376_v33, 23  ;;  %v4706_v59 = vmov 920167782   ;;  %v468_v3 = vor.u32 %v467_v40, %v466_v49 }
  0xb1   : > { %4739 = vst [vmem:[#allocation7_spill] sm:$0xff] %v2700_v15  ;;  %4740 = vst [vmem:[#allocation8_spill] sm:$0xff] %v2714_v27  ;;  %v470_v53 = vshrl.u32 %v4708_v52, %v461_v16  ;;  %v465_v57 = vor.u32 %v464_v35, %v463_v48  ;;  %v472_v58 = vshll.u32 %v4708_v52, %v460_v1  ;;  %v4704_v10 = vmov 1326507024  }
  0xb2   : > { %v473_v60 = vshrl.u32 %v4706_v59, %v461_v16  ;;  %v475_v5 = vshll.u32 %v4706_v59, %v460_v1  ;;  %v476_v12 = vshrl.u32 %v4704_v10, %v461_v16  ;;  %v2746_v13 = vshrl.u32 %v870_v45, 5 }
  0xb3   : > { %v471_v4 = vor.u32 %v470_v53, %v469_v50  ;;  %v2749_v14 = vsel %vm1178_vm6, %v1177_v29, 0  ;;  %v1273_v17 = vand.u32 2139095040, %v2668_v30  ;;  %v2753_v26 = vsub.s32 32, %v2736_v42 }
  0xb4   : > { %v474_v25 = vor.u32 %v473_v60, %v472_v58  ;;  %v2755_v33 = vand.u32 31, %v870_v45  ;;  %v2327_v35 = vadd.s32 4294967169, %v1068_v46  ;;  %v477_v40 = vor.u32 %v476_v12, %v475_v5 }
  0xb5   : > { %v2339_v48 = vadd.s32 4294967169, %v1377_v55  ;;  %v462_v1 = vshrl.u32 %v4713_v47, %v461_v16  ;;  %vm478_vm7 = vcmp.lt.s32.totalorder %v2719_v51, 1  ;;  %vm481_vm8 = vcmp.lt.s32.totalorder %v2719_v51, 4 }
  0xb6   : > { %v2761_v29 = vand.u32 31, %v2749_v14  ;;  %vm480_vm9 = vcmp.lt.s32.totalorder %v2719_v51, 3  ;;  %v483_v49 = vsel %vm481_vm8, %v471_v4, 2102212464  ;;  %v486_v50 = vsel %vm478_vm7, %v465_v57, %v468_v3 }
  0xb7   : > { %v1274_v53 = vshrl.u32 %v1273_v17, 23  ;;  %v482_v58 = vsel %vm478_vm7, %v462_v1, %v465_v57  ;;  %v484_v45 = vsel %vm480_vm9, %v468_v3, %v483_v49  ;;  %v487_v60 = vsel %vm481_vm8, %v474_v25, 920167782 }
  0xb8   : > { %4741 = vst [vmem:[#allocation9_spill] sm:$0xff] %v2761_v29  ;;  %vm479_vm10 = vcmp.lt.s32.totalorder %v2719_v51, 2  ;;  %v488_v46 = vsel %vm480_vm9, %v471_v4, %v487_v60  ;;  %v490_v55 = vsel %vm478_vm7, %v468_v3, %v471_v4  ;;  %v491_v16 = vsel %vm481_vm8, %v477_v40, 1326507024 }
  0xb9   : > { %v2765_v5 = vadd.s32 1, %v2327_v35  ;;  %v1582_v12 = vand.u32 2139095040, %v2673_v37  ;;  %v489_v54 = vsel %vm479_vm10, %v486_v50, %v488_v46  ;;  %v492_v44 = vsel %vm480_vm9, %v474_v25, %v491_v16 }
  0xba   : > { %v485_v21 = vsel %vm479_vm10, %v482_v58, %v484_v45  ;;  %v493_v10 = vsel %vm479_vm10, %v490_v55, %v492_v44  ;;  %v2769_v59 = vmul.u32.u64.low %v2707_v20, %v489_v54  ;;  %v2770_v52 = vmul.u32.u64.high %v2707_v20, %v489_v54, %v2769_v59 }
  0xbb   : > { %v2774_v57 = vmul.u32.u64.low %v2707_v20, %v493_v10  ;;  %v2775_v17 = vmul.u32.u64.high %v2707_v20, %v493_v10, %v2774_v57  ;;  %v669_v51 = vshll.u32 %v4713_v47, %v2697_v7  ;;  %v670_v3 = vshrl.u32 %v4719_v34, %v2717_v28 }
  0xbc   : > { %v672_v4 = vshll.u32 %v4719_v34, %v2697_v7  ;;  %v673_v44 = vshrl.u32 %v4710_v39, %v2717_v28  ;;  %v675_v54 = vshll.u32 %v4710_v39, %v2697_v7  ;;  %v4742_v25 = vmov 2102212464  }
  0xbd   : > { %v676_v35 = vshrl.u32 %v4742_v25, %v2717_v28  ;;  %v671_v10 = vor.u32 %v670_v3, %v669_v51  ;;  %v678_v40 = vshll.u32 %v4742_v25, %v2697_v7  ;;  %v4743_v1 = vmov 920167782  }
  0xbe   : > { %v679_v49 = vshrl.u32 %v4743_v1, %v2717_v28  ;;  %v681_v50 = vshll.u32 %v4743_v1, %v2697_v7  ;;  %v504_v58 = vadd.s32 1, %v2770_v52  ;;  %v674_v45 = vor.u32 %v673_v44, %v672_v4 }
  0xbf   : > { %v677_v60 = vor.u32 %v676_v35, %v675_v54  ;;  %v4744_v46 = vmov 1326507024   ;;  %v1383_v16 = vadd.s32 1, %v2339_v48  ;;  %v501_v57 = vmul.u32 %v2707_v20, %v485_v21 }
  0xc0   : > { %v682_v55 = vshrl.u32 %v4744_v46, %v2717_v28  ;;  %vm503_vm11 = vc.u32 %v2775_v17, %v2769_v59  ;;  %v680_v51 = vor.u32 %v679_v49, %v678_v40  ;;  %v668_v39 = vshrl.u32 %v4713_v47, %v2717_v28 }
  0xc1   : > { %v505_v3 = vsel %vm503_vm11, %v504_v58, %v2770_v52  ;;  %vm684_vm12 = vcmp.lt.s32.totalorder %v2710_v22, 1  ;;  %vm686_vm13 = vcmp.lt.s32.totalorder %v2710_v22, 3  ;;  %vm687_vm14 = vcmp.lt.s32.totalorder %v2710_v22, 4 }
  0xc2   : > { %v683_v7 = vor.u32 %v682_v55, %v681_v50  ;;  %v506_v4 = vadd.s32 %v505_v3, %v501_v57  ;;  %v692_v20 = vsel %vm684_vm12, %v671_v10, %v674_v45  ;;  %v689_v21 = vsel %vm687_vm14, %v677_v60, 2102212464 }
  0xc3   : > { %v693_v48 = vsel %vm687_vm14, %v680_v51, 920167782  ;;  %v696_v44 = vsel %vm684_vm12, %v674_v45, %v677_v60  ;;  %vm685_vm15 = vcmp.lt.s32.totalorder %v2710_v22, 2  ;;  %v1479_v40 = vand.u32 2139095040, %v2678_v41 }
  0xc4   : > { %v697_v52 = vsel %vm687_vm14, %v683_v7, 1326507024  ;;  %v507_v54 = vadd.s32 536870912, %v506_v4  ;;  %v694_v28 = vsel %vm686_vm13, %v677_v60, %v693_v48  ;;  %v4745_v58 = vor.u32 8388608, %v2695_v6 }
  0xc5   : > { %v698_v35 = vsel %vm686_vm13, %v680_v51, %v697_v52  ;;  %v695_v49 = vsel %vm685_vm15, %v692_v20, %v694_v28  ;;  %vm1075_vm0 = vcmp.gt.s32.totalorder %v2765_v5, 0  ;;  %v688_v60 = vsel %vm684_vm12, %v668_v39, %v671_v10 }
  0xc6   : > { %v699_v50 = vsel %vm685_vm15, %v696_v44, %v698_v35  ;;  %v700_v55 = vshll.u32 %v4745_v58, 8  ;;  %v2824_v57 = vshrl.u32 %v507_v54, 30  ;;  %v690_v51 = vsel %vm686_vm13, %v674_v45, %v689_v21 }
  0xc7   : > { %vm1384_vm1 = vcmp.gt.s32.totalorder %v1383_v16, 0  ;;  %v2335_v6 = vadd.s32 4294967169, %v1274_v53  ;;  %v1583_v44 = vshrl.u32 %v1582_v12, 23  ;;  %v2839_v54 = vsub.s32 32, %v2755_v33 }
  0xc8   : > { %v2830_v3 = vmul.u32.u64.low %v700_v55, %v699_v50  ;;  %v2831_v7 = vmul.u32.u64.high %v700_v55, %v699_v50, %v2830_v3  ;;  %v2833_v20 = vmul.u32.u64.low %v700_v55, %v695_v49  ;;  %v2834_v48 = vmul.u32.u64.high %v700_v55, %v695_v49, %v2833_v20 }
  0xc9   : > { %v509_v52 = vshll.u32 %v2824_v57, 30  ;;  %v2842_v39 = vshrl.u32 %v2749_v14, 5  ;;  %v2845_v10 = vsub.s32 32, %v2761_v29  ;;  %v2847_v45 = vshrl.u32 %v1479_v40, 23 }
  0xca   : > { %v2852_v21 = vsel %vm1075_vm0, %v2765_v5, 0  ;;  %v691_v12 = vsel %vm685_vm15, %v688_v60, %v690_v51  ;;  %v4712_v28 = vand.u32 2147483647, %v2650_v9  ;;  %v2859_v35 = vsel %vm1384_vm1, %v1383_v16, 0 }
  0xcb   : > { %4746 = vst [vmem:[#allocation10_spill] sm:$0xff] %v2842_v39  ;;  %4747 = vst [vmem:[#allocation11_spill] sm:$0xff] %v2845_v10  ;;  %v2854_v53 = vsub.s32 %v506_v4, %v509_v52  ;;  %vm709_vm2 = vc.u32 %v2831_v7, %v2833_v20  ;;  %v710_v40 = vadd.s32 1, %v2834_v48  ;;  %v2865_v49 = vadd.s32 1, %v2335_v6 }
  0xcc   : > { %v2867_v5 = vadd.s32 4294967169, %v1583_v44  ;;  %v567_v22 = vshrl.u32 %v4719_v34, %v2731_v56  ;;  %v2873_v50 = vshrl.u32 %v2852_v21, 5  ;;  %v707_v16 = vmul.u32 %v700_v55, %v691_v12 }
  0xcd   : > { %v512_v4 = vsub.s32 0, %v2854_v53  ;;  %v711_v58 = vsel %vm709_vm2, %v710_v40, %v2834_v48  ;;  %v4748_v60 = vmov 2131351028   ;;  %v556_v6 = vand.u32 8388607, %v4712_v28 }
  0xce   : > { %v570_v51 = vshrl.u32 %v4748_v60, %v2731_v56  ;;  %v566_v44 = vshll.u32 %v4713_v47, %v2705_v19  ;;  %v573_v52 = vshrl.u32 %v4742_v25, %v2731_v56  ;;  %v712_v14 = vadd.s32 %v711_v58, %v707_v16 }
  0xcf   : > { %v2304_v3 = vmin.u32 %v512_v4, %v2854_v53  ;;  %v569_v55 = vshll.u32 %v4719_v34, %v2705_v19  ;;  %v575_v48 = vshll.u32 %v4742_v25, %v2705_v19  ;;  %v576_v12 = vshrl.u32 %v4743_v1, %v2731_v56 }
  0xd0   : > { %v568_v4 = vor.u32 %v567_v22, %v566_v44  ;;  %v572_v28 = vshll.u32 %v4748_v60, %v2705_v19  ;;  %v579_v47 = vshrl.u32 %v4744_v46, %v2731_v56  ;;  %v713_v37 = vadd.s32 536870912, %v712_v14 }
  0xd1   : > { %v514_v40 = vclz %v2304_v3  ;;  %v571_v41 = vor.u32 %v570_v51, %v569_v55  ;;  %v577_v16 = vor.u32 %v576_v12, %v575_v48  ;;  %v578_v58 = vshll.u32 %v4743_v1, %v2705_v19 }
  0xd2   : > { %v502_v34 = vadd.s32 %v2769_v59, %v2775_v17  ;;  %v574_v15 = vor.u32 %v573_v52, %v572_v28  ;;  %vm584_vm3 = vcmp.lt.s32.totalorder %v2723_v32, 4  ;;  %v532_v22 = vsub.s32 4, %v2824_v57 }
  0xd3   : > { %v2305_v24 = vadd.s32 4294967294, %v514_v40  ;;  %v2901_v3 = vshrl.u32 %v713_v37, 30  ;;  %v580_v44 = vor.u32 %v579_v47, %v578_v58  ;;  %v590_v27 = vsel %vm584_vm3, %v577_v16, 920167782 }
  0xd4   : > { %vm448_vm4 = vcmp.lt.s32.totalorder %v2633_v62, 0  ;;  %v557_v51 = vor.u32 8388608, %v556_v6  ;;  %vm581_vm6 = vcmp.lt.s32.totalorder %v2723_v32, 1  ;;  %vm582_vm7 = vcmp.lt.s32.totalorder %v2723_v32, 2 }
  0xd5   : > { %vm2306_vm5 = vcmp.lt.s32.totalorder %v2305_v24, 0  ;;  %v715_v59 = vshll.u32 %v2901_v3, 30  ;;  %vm583_vm8 = vcmp.lt.s32.totalorder %v2723_v32, 3  ;;  %v589_v37 = vsel %vm581_vm6, %v568_v4, %v571_v41 }
  0xd6   : > { %v517_v19 = vsel %vm2306_vm5, 0, %v2305_v24  ;;  %v591_v28 = vsel %vm583_vm8, %v574_v15, %v590_v27  ;;  %v593_v6 = vsel %vm581_vm6, %v571_v41, %v574_v15  ;;  %v4749_v52 = vand.u32 2147483647, %v2633_v62 }
  0xd7   : > { %v518_v47 = vsub.s32 32, %v517_v19  ;;  %v522_v17 = vsub.s32 4294967266, %v517_v19  ;;  %v519_v24 = vshll.u32 %v2854_v53, %v517_v19  ;;  %v2923_v48 = vsub.s32 %v712_v14, %v715_v59 }
  0xd8   : > { %vm2918_vm9 = vcmp.le.f32.partialorder %v4749_v52, 0.7853982  ;;  %v586_v12 = vsel %vm584_vm3, %v574_v15, 2102212464  ;;  %v594_v40 = vsel %vm584_vm3, %v580_v44, 1326507024  ;;  %v592_v53 = vsel %vm582_vm7, %v589_v37, %v591_v28 }
  0xd9   : > { %v520_v27 = vshrl.u32 %v502_v34, %v518_v47  ;;  %v523_v58 = vadd.s32 127, %v522_v17  ;;  %v595_v30 = vsel %vm583_vm8, %v577_v16, %v594_v40  ;;  %v597_v39 = vshll.u32 %v557_v51, 8 }
  0xda   : > { %v718_v52 = vsub.s32 0, %v2923_v48  ;;  %v4752_v29 = vmov 683565275   ;;  %v596_v15 = vsel %vm582_vm7, %v593_v6, %v595_v30  ;;  %v2942_v59 = vand.u32 31, %v2852_v21 }
  0xdb   : > { %v565_v10 = vshrl.u32 %v4752_v29, %v2731_v56  ;;  %v521_v14 = vor.u32 %v520_v27, %v519_v24  ;;  %v524_v19 = vshll.u32 %v523_v58, 23  ;;  %v587_v56 = vsel %vm583_vm8, %v571_v41, %v586_v12 }
  0xdc   : > { %v2938_v44 = vmul.u32.u64.low %v597_v39, %v596_v15  ;;  %v2939_v34 = vmul.u32.u64.high %v597_v39, %v596_v15, %v2938_v44  ;;  %v2312_v16 = vmin.u32 %v718_v52, %v2923_v48  ;;  %v2950_v37 = vshrl.u32 %v2859_v35, 5 }
  0xdd   : > { %v585_v51 = vsel %vm581_vm6, %v565_v10, %v568_v4  ;;  %v525_v30 = vor.u32 4788187, %v524_v19  ;;  %v2952_v47 = vmul.u32.u64.low %v597_v39, %v592_v53  ;;  %v2953_v17 = vmul.u32.u64.high %v597_v39, %v592_v53, %v2952_v47 }
  0xde   : > { %v2957_v28 = vand.u32 31, %v2859_v35  ;;  %v533_v21 = vsel %vm448_vm4, %v532_v22, %v2824_v57  ;;  %v720_v6 = vclz %v2312_v16  ;;  %v4731_v10 = vand.u32 2147483647, %v2647_v8 }
  0xdf   : > { %v2964_v41 = vadd.s32 1, %v2867_v5  ;;  %v526_v4 = vand.u32 2147483647, %v525_v30  ;;  %v528_v24 = vcvt.s32.f32 %v521_v14  ;;  %v588_v12 = vsel %vm582_vm7, %v585_v51, %v587_v56 }
  0xe0   : > { %v2969_v40 = vadd.s32 4294967169, %v2847_v45  ;;  %v4753_v35 = vand.u32 2139095040, %v2681_v43  ;;  %v2313_v58 = vadd.s32 4294967294, %v720_v6  ;;  %vm606_vm10 = vc.u32 %v2939_v34, %v2952_v47 }
  0xe1   : > { %v529_v57 = vmul.f32 %v528_v24, %v526_v4  ;;  %v535_v5 = vsel %vm2918_vm9, 0, %v533_v21  ;;  %v708_v22 = vadd.s32 %v2833_v20, %v2831_v7  ;;  %v607_v32 = vadd.s32 1, %v2953_v17 }
  0xe2   : > { %v2973_v27 = vshrl.u32 %v4753_v35, 23  ;;  %vm2314_vm11 = vcmp.lt.s32.totalorder %v2313_v58, 0  ;;  %v738_v45 = vsub.s32 4, %v2901_v3  ;;  %v604_v52 = vmul.u32 %v597_v39, %v588_v12 }
  0xe3   : > { %v2985_v53 = vand.u32 8388607, %v4731_v10  ;;  %v530_v15 = vxor.u32 2147483648, %v529_v57  ;;  %v723_v14 = vsel %vm2314_vm11, 0, %v2313_v58  ;;  %v608_v19 = vsel %vm606_vm10, %v607_v32, %v2953_v17 }
  0xe4   : > { %v772_v44 = vshll.u32 %v4752_v29, %v2703_v18  ;;  %vm654_vm12 = vcmp.lt.s32.totalorder %v2630_v61, 0  ;;  %v724_v7 = vsub.s32 32, %v723_v14  ;;  %v728_v20 = vsub.s32 4294967266, %v723_v14 }
  0xe5   : > { %v609_v16 = vadd.s32 %v608_v19, %v604_v52  ;;  %v4754_v51 = vmov 2475754826   ;;  %v531_v39 = vsel %vm448_vm4, %v530_v15, %v529_v57  ;;  %v725_v30 = vshll.u32 %v2923_v48, %v723_v14 }
  0xe6   : > { %v773_v56 = vshrl.u32 %v4754_v51, %v2728_v36  ;;  %v775_v21 = vshll.u32 %v4754_v51, %v2703_v18  ;;  %v776_v17 = vshrl.u32 %v4748_v60, %v2728_v36  ;;  %v534_v6 = vsel %vm2918_vm9, %v2633_v62, %v531_v39 }
  0xe7   : > { %v726_v4 = vshrl.u32 %v708_v22, %v724_v7  ;;  %v729_v24 = vadd.s32 127, %v728_v20  ;;  %v610_v12 = vadd.s32 536870912, %v609_v16  ;;  %2451 = vcosq.f32 %v534_v6 }
  0xe8   : > { %v779_v35 = vshrl.u32 %v4742_v25, %v2728_v36  ;;  %v781_v48 = vshll.u32 %v4742_v25, %v2703_v18  ;;  %v782_v58 = vshrl.u32 %v4743_v1, %v2728_v36  ;;  %2453 = vsinq.f32 %v534_v6 }
  0xe9   : > { %v4755_v57 = vand.u32 2147483647, %v2630_v61  ;;  %v727_v55 = vor.u32 %v726_v4, %v725_v30  ;;  %v730_v22 = vshll.u32 %v729_v24, 23  ;;  %v3015_v52 = vshrl.u32 %v610_v12, 30 }
  0xea   : > { %v778_v15 = vshll.u32 %v4748_v60, %v2703_v18  ;;  %v783_v14 = vor.u32 %v782_v58, %v781_v48  ;;  %v784_v19 = vshll.u32 %v4743_v1, %v2703_v18  ;;  %v785_v7 = vshrl.u32 %v4744_v46, %v2728_v36 }
  0xeb   : > { %vm3011_vm13 = vcmp.le.f32.partialorder %v4755_v57, 0.7853982  ;;  %v731_v20 = vor.u32 4788187, %v730_v22  ;;  %v612_v39 = vshll.u32 %v3015_v52, 30  ;;  %v774_v6 = vor.u32 %v773_v56, %v772_v44 }
  0xec   : > { %v777_v57 = vor.u32 %v776_v17, %v775_v21  ;;  %v3025_v30 = vsub.s32 32, %v2942_v59  ;;  %v539_v4 = vand.u32 3, %v535_v5  ;;  %v780_v24 = vor.u32 %v779_v35, %v778_v15 }
  0xed   : > { %v786_v12 = vor.u32 %v785_v7, %v784_v19  ;;  %v732_v10 = vand.u32 2147483647, %v731_v20  ;;  %v734_v43 = vcvt.s32.f32 %v727_v55  ;;  %v3027_v48 = vsub.s32 %v609_v16, %v612_v39 }
  0xee   : > { %vm790_vm14 = vcmp.lt.s32.totalorder %v2721_v31, 4  ;;  %v739_v18 = vsel %vm654_vm12, %v738_v45, %v2901_v3  ;;  %v763_v58 = vor.u32 8388608, %v2985_v53  ;;  %vm787_vm15 = vcmp.lt.s32.totalorder %v2721_v31, 1 }
  0xef   : > { %v796_v44 = vsel %vm790_vm14, %v783_v14, 920167782  ;;  %v735_v5 = vmul.f32 %v734_v43, %v732_v10  ;;  %v615_v56 = vsub.s32 0, %v3027_v48  ;;  %vm789_vm0 = vcmp.lt.s32.totalorder %v2721_v31, 3 }
  0xf0   : > { %v795_v16 = vsel %vm787_vm15, %v774_v6, %v777_v57  ;;  %vm541_vm1 = vcmp.eq.s32.totalorder %v539_v4, 0  ;;  %v771_v21 = vshrl.u32 %v4752_v29, %v2728_v36  ;;  %v797_v3 = vsel %vm789_vm0, %v780_v24, %v796_v44 }
  0xf1   : > { %v799_v45 = vsel %vm787_vm15, %v777_v57, %v780_v24  ;;  %v800_v43 = vsel %vm790_vm14, %v786_v12, 1326507024  ;;  %vm540_vm2 = vcmp.lt.s32.totalorder %v539_v4, 2  ;;  %v736_v10 = vxor.u32 2147483648, %v735_v5 }
  0xf2   : > { %v2308_v53 = vmin.u32 %v615_v56, %v3027_v48  ;;  %vm788_vm3 = vcmp.lt.s32.totalorder %v2721_v31, 2  ;;  %v792_v17 = vsel %vm790_vm14, %v780_v24, 2102212464  ;;  %vm538_vm4 = vweird.f32 %v2633_v62 }
  0xf3   : > { %v741_v36 = vsel %vm3011_vm13, 0, %v739_v18  ;;  %v798_v35 = vsel %vm788_vm3, %v795_v16, %v797_v3  ;;  %v801_v55 = vsel %vm789_vm0, %v783_v14, %v800_v43  ;;  %v803_v22 = vshll.u32 %v763_v58, 8 }
  0xf4   : > { %v737_v15 = vsel %vm654_vm12, %v736_v10, %v735_v5  ;;  %v617_v19 = vclz %v2308_v53  ;;  %v791_v7 = vsel %vm787_vm15, %v771_v21, %v774_v6  ;;  %v802_v20 = vsel %vm788_vm3, %v799_v45, %v801_v55  ;;  %v2452_v18 = vpop.eup %2451 }
  0xf5   : > { %v740_v39 = vsel %vm3011_vm13, %v2630_v61, %v737_v15  ;;  %v793_v24 = vsel %vm789_vm0, %v777_v57, %v792_v17  ;;  %v3071_v12 = vmul.u32.u64.low %v803_v22, %v802_v20  ;;  %v3072_v14 = vmul.u32.u64.high %v803_v22, %v802_v20, %v3071_v12  ;;  %v2454_v6 = vpop.eup %2453 }
  0xf6   : > { %2455 = vcosq.f32 %v740_v39  ;;  %v2309_v58 = vadd.s32 4294967294, %v617_v19  ;;  %v3074_v44 = vmul.u32.u64.low %v803_v22, %v798_v35  ;;  %v3075_v5 = vmul.u32.u64.high %v803_v22, %v798_v35, %v3074_v44 }
  0xf7   : > { %vm544_vm5 = vcmp.eq.s32.totalorder %v539_v4, 2  ;;  %v545_v56 = vxor.u32 2147483648, %v2452_v18  ;;  %2457 = vsinq.f32 %v740_v39  ;;  %v3078_v16 = vand.u32 3, %v741_v36 }
  0xf8   : > { %v542_v32 = vxor.u32 2147483648, %v2454_v6  ;;  %v605_v57 = vadd.s32 %v2952_v47, %v2939_v34  ;;  %vm2310_vm6 = vcmp.lt.s32.totalorder %v2309_v58, 0  ;;  %v794_v21 = vsel %vm788_vm3, %v791_v7, %v793_v24 }
  0xf9   : > { %v546_v3 = vsel %vm544_vm5, %v545_v56, %v2454_v6  ;;  %v620_v45 = vsel %vm2310_vm6, 0, %v2309_v58  ;;  %v635_v43 = vsub.s32 4, %v3015_v52  ;;  %v858_v10 = vand.u32 2147483647, %v2641_v2 }
  0xfa   : > { %v543_v53 = vsel %vm541_vm1, %v2452_v18, %v542_v32  ;;  %v621_v17 = vsub.s32 32, %v620_v45  ;;  %v625_v35 = vsub.s32 4294967266, %v620_v45  ;;  %vm812_vm7 = vc.u32 %v3072_v14, %v3074_v44 }
  0xfb   : > { %v547_v36 = vsel %vm540_vm2, %v543_v53, %v546_v3  ;;  %vm551_vm8 = vcmp.lt.s32.totalorder %v2650_v9, 0  ;;  %v810_v34 = vmul.u32 %v803_v22, %v794_v21  ;;  %v813_v31 = vadd.s32 1, %v3075_v5 }
  0xfc   : > { %v548_v47 = vsel %vm538_vm4, nan, %v547_v36  ;;  %v622_v55 = vshll.u32 %v3027_v48, %v620_v45  ;;  %v623_v15 = vshrl.u32 %v605_v57, %v621_v17  ;;  %v626_v19 = vadd.s32 127, %v625_v35 }
  0xfd   : > { %2143 = vrot.lane.b32.xlu0 %v548_v47, %s2530_s7  ;;  %v4758_v7 = vand.u32 2147483647, %v2650_v9  ;;  %v3105_v22 = vsel %vm551_vm8, %v635_v43, %v3015_v52  ;;  %v814_v62 = vsel %vm812_vm7, %v813_v31, %v3075_v5  ;;  %v3110_v48 = vand.u32 8388607, %v858_v10 }
  0xfe   : > { %vm747_vm10 = vcmp.eq.s32.totalorder %v3078_v16, 0  ;;  %v624_v20 = vor.u32 %v623_v15, %v622_v55  ;;  %v627_v39 = vshll.u32 %v626_v19, 23  ;;  %v815_v24 = vadd.s32 %v814_v62, %v810_v34 }
  0xff   : > { %vm3098_vm9 = vcmp.le.f32.partialorder %v4758_v7, 0.7853982  ;;  %v876_v12 = vshrl.u32 %v4754_v51, %v2839_v54  ;;  %vm746_vm11 = vcmp.lt.s32.totalorder %v3078_v16, 2  ;;  %v879_v52 = vshrl.u32 %v4748_v60, %v2839_v54 }
 0x100   : > { %v882_v18 = vshrl.u32 %v4742_v25, %v2839_v54  ;;  %v884_v58 = vshll.u32 %v4742_v25, %v2755_v33  ;;  %v885_v5 = vshrl.u32 %v4743_v1, %v2839_v54  ;;  %vm1281_vm12 = vcmp.gt.s32.totalorder %v2865_v49, 0 }
 0x101   : > { %vm744_vm13 = vweird.f32 %v2630_v61  ;;  %vm750_vm14 = vcmp.eq.s32.totalorder %v3078_v16, 2  ;;  %v628_v6 = vor.u32 4788187, %v627_v39  ;;  %v638_v56 = vsel %vm3098_vm9, 0, %v3105_v22 }
 0x102   : > { %v816_v32 = vadd.s32 536870912, %v815_v24  ;;  %v875_v57 = vshll.u32 %v4752_v29, %v2755_v33  ;;  %v878_v21 = vshll.u32 %v4754_v51, %v2755_v33  ;;  %v881_v3 = vshll.u32 %v4748_v60, %v2755_v33 }
 0x103   : > { %v886_v45 = vor.u32 %v885_v5, %v884_v58  ;;  %v629_v43 = vand.u32 2147483647, %v628_v6  ;;  %v631_v53 = vcvt.s32.f32 %v624_v20  ;;  %v866_v35 = vor.u32 8388608, %v3110_v48  ;;  %v2456_v36 = vpop.eup %2455 }
 0x104   : > { %v3136_v17 = vshrl.u32 %v816_v32, 30  ;;  %v877_v34 = vor.u32 %v876_v12, %v875_v57  ;;  %v880_v31 = vor.u32 %v879_v52, %v878_v21  ;;  %v883_v47 = vor.u32 %v882_v18, %v881_v3  ;;  %v2458_v15 = vpop.eup %2457 }
 0x105   : > { %v888_v55 = vshrl.u32 %v4744_v46, %v2839_v54  ;;  %v751_v19 = vxor.u32 2147483648, %v2456_v36  ;;  %v632_v7 = vmul.f32 %v631_v53, %v629_v43  ;;  %vm893_vm15 = vcmp.lt.s32.totalorder %v2746_v13, 4 }
 0x106   : > { %v818_v22 = vshll.u32 %v3136_v17, 30  ;;  %v748_v62 = vxor.u32 2147483648, %v2458_v15  ;;  %v887_v20 = vshll.u32 %v4743_v1, %v2755_v33  ;;  %vm890_vm0 = vcmp.lt.s32.totalorder %v2746_v13, 1 }
 0x107   : > { %v899_v48 = vsel %vm893_vm15, %v886_v45, 920167782  ;;  %v752_v39 = vsel %vm750_vm14, %v751_v19, %v2458_v15  ;;  %v633_v12 = vxor.u32 2147483648, %v632_v7  ;;  %vm892_vm1 = vcmp.lt.s32.totalorder %v2746_v13, 3 }
 0x108   : > { %v3150_v52 = vsub.s32 %v815_v24, %v818_v22  ;;  %v749_v18 = vsel %vm747_vm10, %v2456_v36, %v748_v62  ;;  %v889_v58 = vor.u32 %v888_v55, %v887_v20  ;;  %v898_v33 = vsel %vm890_vm0, %v877_v34, %v880_v31 }
 0x109   : > { %v900_v5 = vsel %vm892_vm1, %v883_v47, %v899_v48  ;;  %v753_v6 = vsel %vm746_vm11, %v749_v18, %v752_v39  ;;  %v634_v32 = vsel %vm551_vm8, %v633_v12, %v632_v7  ;;  %v874_v57 = vshrl.u32 %v4752_v29, %v2839_v54 }
 0x10a   : > { %v821_v24 = vsub.s32 0, %v3150_v52  ;;  %v754_v21 = vsel %vm744_vm13, nan, %v753_v6  ;;  %v637_v3 = vsel %vm3098_vm9, %v2650_v9, %v634_v32  ;;  %vm891_vm2 = vcmp.lt.s32.totalorder %v2746_v13, 2 }
 0x10b   : > { %v895_v16 = vsel %vm893_vm15, %v883_v47, 2102212464  ;;  %2147 = vrot.lane.b32.xlu0 %v754_v21, %s2530_s7  ;;  %2459 = vcosq.f32 %v637_v3  ;;  %v901_v54 = vsel %vm891_vm2, %v898_v33, %v900_v5  ;;  %v902_v61 = vsel %vm890_vm0, %v880_v31, %v883_v47 }
 0x10c   : > { %v2316_v43 = vmin.u32 %v821_v24, %v3150_v52  ;;  %v1282_v4 = vsel %vm1281_vm12, %v2865_v49, 0  ;;  %2461 = vsinq.f32 %v637_v3  ;;  %v903_v53 = vsel %vm893_vm15, %v889_v58, 1326507024 }
 0x10d   : > { %v906_v36 = vshll.u32 %v866_v35, 8  ;;  %v894_v15 = vsel %vm890_vm0, %v874_v57, %v877_v34  ;;  %v896_v19 = vsel %vm892_vm1, %v880_v31, %v895_v16  ;;  %v904_v7 = vsel %vm892_vm1, %v886_v45, %v903_v53 }
 0x10e   : > { %v823_v55 = vclz %v2316_v43  ;;  %v3191_v47 = vand.u32 3, %v638_v56  ;;  %v905_v49 = vsel %vm891_vm2, %v902_v61, %v904_v7  ;;  %v841_v20 = vsub.s32 4, %v3136_v17 }
 0x10f   : > { %v3195_v22 = vmul.u32.u64.low %v906_v36, %v901_v54  ;;  %v3196_v62 = vmul.u32.u64.high %v906_v36, %v901_v54, %v3195_v22  ;;  %v3200_v48 = vmul.u32.u64.low %v906_v36, %v905_v49  ;;  %v3201_v34 = vmul.u32.u64.high %v906_v36, %v905_v49, %v3200_v48 }
 0x110   : > { %v2317_v35 = vadd.s32 4294967294, %v823_v55  ;;  %v3204_v31 = vsub.s32 32, %v2957_v28  ;;  %v3206_v39 = vshrl.u32 %v1282_v4, 5  ;;  %v897_v56 = vsel %vm891_vm2, %v894_v15, %v896_v19 }
 0x111   : > { %v961_v45 = vand.u32 2147483647, %v2636_v63  ;;  %v3211_v12 = vand.u32 31, %v1282_v4  ;;  %v3214_v18 = vadd.s32 1, %v2969_v40  ;;  %vm757_vm3 = vcmp.lt.s32.totalorder %v2647_v8, 0 }
 0x112   : > { %vm2318_vm4 = vcmp.lt.s32.totalorder %v2317_v35, 0  ;;  %vm647_vm5 = vcmp.eq.s32.totalorder %v3191_v47, 2  ;;  %v811_v58 = vadd.s32 %v3074_v44, %v3072_v14  ;;  %v916_v5 = vadd.s32 1, %v3196_v62 }
 0x113   : > { %v826_v33 = vsel %vm2318_vm4, 0, %v2317_v35  ;;  %vm644_vm6 = vcmp.eq.s32.totalorder %v3191_v47, 0  ;;  %v3225_v40 = vsel %vm757_vm3, %v841_v20, %v3136_v17  ;;  %v913_v32 = vmul.u32 %v906_v36, %v897_v56 }
 0x114   : > { %v827_v13 = vsub.s32 32, %v826_v33  ;;  %v831_v6 = vsub.s32 4294967266, %v826_v33  ;;  %vm643_vm7 = vcmp.lt.s32.totalorder %v3191_v47, 2  ;;  %vm915_vm8 = vc.u32 %v3201_v34, %v3195_v22 }
 0x115   : > { %v3232_v14 = vand.u32 8388607, %v961_v45  ;;  %v978_v44 = vshll.u32 %v4752_v29, %v2736_v42  ;;  %v979_v24 = vshrl.u32 %v4754_v51, %v2753_v26  ;;  %vm641_vm9 = vweird.f32 %v2650_v9 }
 0x116   : > { %v828_v17 = vshll.u32 %v3150_v52, %v826_v33  ;;  %v829_v57 = vshrl.u32 %v811_v58, %v827_v13  ;;  %v832_v21 = vadd.s32 127, %v831_v6  ;;  %v917_v3 = vsel %vm915_vm8, %v916_v5, %v3196_v62 }
 0x117   : > { %v918_v16 = vadd.s32 %v917_v3, %v913_v32  ;;  %v981_v43 = vshll.u32 %v4754_v51, %v2736_v42  ;;  %v985_v54 = vshrl.u32 %v4742_v25, %v2753_v26  ;;  %v988_v61 = vshrl.u32 %v4743_v1, %v2753_v26 }
 0x118   : > { %v830_v4 = vor.u32 %v829_v57, %v828_v17  ;;  %v833_v53 = vshll.u32 %v832_v21, 23  ;;  %v982_v36 = vshrl.u32 %v4748_v60, %v2753_v26  ;;  %v987_v52 = vshll.u32 %v4742_v25, %v2736_v42  ;;  %v2460_v55 = vpop.eup %2459 }
 0x119   : > { %v919_v15 = vadd.s32 536870912, %v918_v16  ;;  %v969_v19 = vor.u32 8388608, %v3232_v14  ;;  %v984_v7 = vshll.u32 %v4748_v60, %v2736_v42  ;;  %v991_v49 = vshrl.u32 %v4744_v46, %v2753_v26  ;;  %v2462_v62 = vpop.eup %2461 }
 0x11a   : > { %v648_v35 = vxor.u32 2147483648, %v2460_v55  ;;  %v4761_v20 = vand.u32 2147483647, %v2647_v8  ;;  %v834_v56 = vor.u32 4788187, %v833_v53  ;;  %v980_v58 = vor.u32 %v979_v24, %v978_v44 }
 0x11b   : > { %v989_v33 = vor.u32 %v988_v61, %v987_v52  ;;  %vm1590_vm11 = vcmp.gt.s32.totalorder %v2964_v41, 0  ;;  %v645_v5 = vxor.u32 2147483648, %v2462_v62  ;;  %v3263_v13 = vshrl.u32 %v919_v15, 30 }
 0x11c   : > { %vm3258_vm10 = vcmp.le.f32.partialorder %v4761_v20, 0.7853982  ;;  %v986_v6 = vor.u32 %v985_v54, %v984_v7  ;;  %v990_v32 = vshll.u32 %v4743_v1, %v2736_v42  ;;  %v649_v14 = vsel %vm647_vm5, %v648_v35, %v2462_v62 }
 0x11d   : > { %v835_v17 = vand.u32 2147483647, %v834_v56  ;;  %v837_v57 = vcvt.s32.f32 %v830_v4  ;;  %v983_v21 = vor.u32 %v982_v36, %v981_v43  ;;  %v646_v3 = vsel %vm644_vm6, %v2460_v55, %v645_v5 }
 0x11e   : > { %v921_v44 = vshll.u32 %v3263_v13, 30  ;;  %v992_v24 = vor.u32 %v991_v49, %v990_v32  ;;  %vm996_vm12 = vcmp.lt.s32.totalorder %v2733_v38, 4  ;;  %v650_v54 = vsel %vm643_vm7, %v646_v3, %v649_v14 }
 0x11f   : > { %v838_v61 = vmul.f32 %v837_v57, %v835_v17  ;;  %vm993_vm13 = vcmp.lt.s32.totalorder %v2733_v38, 1  ;;  %v1002_v42 = vsel %vm996_vm12, %v989_v33, 920167782  ;;  %v651_v43 = vsel %vm641_vm9, nan, %v650_v54 }
 0x120   : > { %v3280_v4 = vsub.s32 %v918_v16, %v921_v44  ;;  %vm995_vm14 = vcmp.lt.s32.totalorder %v2733_v38, 3  ;;  %v998_v53 = vsel %vm996_vm12, %v986_v6, 2102212464  ;;  %2145 = vrot.lane.b32.xlu1 %v651_v43, %s2530_s7  ;;  %v977_v36 = vshrl.u32 %v4752_v29, %v2753_v26 }
 0x121   : > { %v839_v47 = vxor.u32 2147483648, %v838_v61  ;;  %v1001_v52 = vsel %vm993_vm13, %v980_v58, %v983_v21  ;;  %v1003_v55 = vsel %vm995_vm14, %v986_v6, %v1002_v42  ;;  %vm994_vm15 = vcmp.lt.s32.totalorder %v2733_v38, 2 }
 0x122   : > { %v924_v9 = vsub.s32 0, %v3280_v4  ;;  %v1005_v16 = vsel %vm993_vm13, %v983_v21, %v986_v6  ;;  %v1006_v15 = vsel %vm996_vm12, %v992_v24, 1326507024  ;;  %v997_v26 = vsel %vm993_vm13, %v977_v36, %v980_v58 }
 0x123   : > { %v840_v7 = vsel %vm757_vm3, %v839_v47, %v838_v61  ;;  %v999_v49 = vsel %vm995_vm14, %v983_v21, %v998_v53  ;;  %v1007_v62 = vsel %vm995_vm14, %v989_v33, %v1006_v15  ;;  %v1004_v56 = vsel %vm994_vm15, %v1001_v52, %v1003_v55 }
 0x124   : > { %v843_v35 = vsel %vm3258_vm10, %v2647_v8, %v840_v7  ;;  %v2320_v20 = vmin.u32 %v924_v9, %v3280_v4  ;;  %v1009_v5 = vshll.u32 %v969_v19, 8  ;;  %v844_v6 = vsel %vm3258_vm10, 0, %v3225_v40 }
 0x125   : > { %2463 = vcosq.f32 %v843_v35  ;;  %v1008_v58 = vsel %vm994_vm15, %v1005_v16, %v1007_v62  ;;  %v1064_v33 = vand.u32 2147483647, %v2661_v23  ;;  %v3318_v57 = vsel %vm1590_vm11, %v2964_v41, 0 }
 0x126   : > { %2465 = vsinq.f32 %v843_v35  ;;  %v926_v32 = vclz %v2320_v20  ;;  %v3312_v14 = vmul.u32.u64.low %v1009_v5, %v1008_v58  ;;  %v3313_v17 = vmul.u32.u64.high %v1009_v5, %v1008_v58, %v3312_v14 }
 0x127   : > { %v1000_v19 = vsel %vm994_vm15, %v997_v26, %v999_v49  ;;  %v3322_v40 = vmul.u32.u64.low %v1009_v5, %v1004_v56  ;;  %v3323_v48 = vmul.u32.u64.high %v1009_v5, %v1004_v56, %v3322_v40  ;;  %v3327_v21 = vadd.s32 4294967169, %v2973_v27 }
 0x128   : > { %v1685_v3 = vand.u32 2139095040, %v2690_v0  ;;  %v3330_v44 = vand.u32 3, %v844_v6  ;;  %v2321_v24 = vadd.s32 4294967294, %v926_v32  ;;  %v3333_v54 = vsub.s32 32, %v3211_v12 }
 0x129   : > { %vm860_vm0 = vcmp.lt.s32.totalorder %v2641_v2, 0  ;;  %v914_v38 = vadd.s32 %v3195_v22, %v3201_v34  ;;  %v944_v41 = vsub.s32 4, %v3263_v13  ;;  %v1016_v61 = vmul.u32 %v1009_v5, %v1000_v19 }
 0x12a   : > { %vm2322_vm1 = vcmp.lt.s32.totalorder %v2321_v24, 0  ;;  %vm1018_vm2 = vc.u32 %v3313_v17, %v3322_v40  ;;  %v3343_v27 = vand.u32 8388607, %v1064_v33  ;;  %v1019_v43 = vadd.s32 1, %v3323_v48 }
 0x12b   : > { %v929_v42 = vsel %vm2322_vm1, 0, %v2321_v24  ;;  %v1081_v53 = vshll.u32 %v4752_v29, %v2942_v59  ;;  %v1082_v22 = vshrl.u32 %v4754_v51, %v3025_v30  ;;  %vm853_vm3 = vcmp.eq.s32.totalorder %v3330_v44, 2 }
 0x12c   : > { %v930_v34 = vsub.s32 32, %v929_v42  ;;  %v934_v47 = vsub.s32 4294967266, %v929_v42  ;;  %v1084_v36 = vshll.u32 %v4754_v51, %v2942_v59  ;;  %v1085_v52 = vshrl.u32 %v4748_v60, %v3025_v30 }
 0x12d   : > { %vm850_vm4 = vcmp.eq.s32.totalorder %v3330_v44, 0  ;;  %v1020_v55 = vsel %vm1018_vm2, %v1019_v43, %v3323_v48  ;;  %v1088_v9 = vshrl.u32 %v4742_v25, %v3025_v30  ;;  %v1090_v16 = vshll.u32 %v4742_v25, %v2942_v59 }
 0x12e   : > { %v1091_v15 = vshrl.u32 %v4743_v1, %v3025_v30  ;;  %vm849_vm5 = vcmp.lt.s32.totalorder %v3330_v44, 2  ;;  %v931_v7 = vshll.u32 %v3280_v4, %v929_v42  ;;  %v932_v26 = vshrl.u32 %v914_v38, %v930_v34 }
 0x12f   : > { %v935_v49 = vadd.s32 127, %v934_v47  ;;  %v1021_v62 = vadd.s32 %v1020_v55, %v1016_v61  ;;  %vm847_vm6 = vweird.f32 %v2647_v8  ;;  %v1087_v35 = vshll.u32 %v4748_v60, %v2942_v59 }
 0x130   : > { %v1092_v20 = vor.u32 %v1091_v15, %v1090_v16  ;;  %v1093_v56 = vshll.u32 %v4743_v1, %v2942_v59  ;;  %v1094_v5 = vshrl.u32 %v4744_v46, %v3025_v30  ;;  %vm3374_vm7 = vcmp.le.f32.partialorder %v858_v10, 0.7853982 }
 0x131   : > { %v933_v4 = vor.u32 %v932_v26, %v931_v7  ;;  %v936_v58 = vshll.u32 %v935_v49, 23  ;;  %v3381_v32 = vsel %vm860_vm0, %v944_v41, %v3263_v13  ;;  %v1022_v14 = vadd.s32 536870912, %v1021_v62 }
 0x132   : > { %v1083_v19 = vor.u32 %v1082_v22, %v1081_v53  ;;  %v1086_v48 = vor.u32 %v1085_v52, %v1084_v36  ;;  %v1089_v59 = vor.u32 %v1088_v9, %v1087_v35  ;;  %v1095_v24 = vor.u32 %v1094_v5, %v1093_v56  ;;  %v2464_v38 = vpop.eup %2463 }
 0x133   : > { %v937_v61 = vor.u32 4788187, %v936_v58  ;;  %v1023_v42 = vshrl.u32 %v1022_v14, 30  ;;  %v1072_v10 = vor.u32 8388608, %v3343_v27  ;;  %vm1099_vm8 = vcmp.lt.s32.totalorder %v2873_v50, 4  ;;  %v2466_v43 = vpop.eup %2465 }
 0x134   : > { %vm1487_vm9 = vcmp.gt.s32.totalorder %v3214_v18, 0  ;;  %v854_v34 = vxor.u32 2147483648, %v2464_v38  ;;  %vm1096_vm10 = vcmp.lt.s32.totalorder %v2873_v50, 1  ;;  %vm1098_vm11 = vcmp.lt.s32.totalorder %v2873_v50, 3 }
 0x135   : > { %v1105_v13 = vsel %vm1099_vm8, %v1092_v20, 920167782  ;;  %v851_v41 = vxor.u32 2147483648, %v2466_v43  ;;  %v938_v53 = vand.u32 2147483647, %v937_v61  ;;  %v940_v22 = vcvt.s32.f32 %v933_v4 }
 0x136   : > { %v1024_v47 = vshll.u32 %v1023_v42, 30  ;;  %v855_v27 = vsel %vm853_vm3, %v854_v34, %v2466_v43  ;;  %v1104_v36 = vsel %vm1096_vm10, %v1083_v19, %v1086_v48  ;;  %v1108_v52 = vsel %vm1096_vm10, %v1086_v48, %v1089_v59 }
 0x137   : > { %v1109_v55 = vsel %vm1099_vm8, %v1095_v24, 1326507024  ;;  %v852_v9 = vsel %vm850_vm4, %v2464_v38, %v851_v41  ;;  %v941_v16 = vmul.f32 %v940_v22, %v938_v53  ;;  %v1106_v7 = vsel %vm1098_vm11, %v1089_v59, %v1105_v13 }
 0x138   : > { %v3400_v15 = vsub.s32 %v1021_v62, %v1024_v47  ;;  %v856_v26 = vsel %vm849_vm5, %v852_v9, %v855_v27  ;;  %v1080_v49 = vshrl.u32 %v4752_v29, %v3025_v30  ;;  %vm1097_vm12 = vcmp.lt.s32.totalorder %v2873_v50, 2 }
 0x139   : > { %v1110_v35 = vsel %vm1098_vm11, %v1092_v20, %v1109_v55  ;;  %v857_v56 = vsel %vm847_vm6, nan, %v856_v26  ;;  %v942_v5 = vxor.u32 2147483648, %v941_v16  ;;  %v1101_v4 = vsel %vm1099_vm8, %v1089_v59, 2102212464 }
 0x13a   : > { %v1027_v62 = vsub.s32 0, %v3400_v15  ;;  %2149 = vrot.lane.b32.xlu1 %v857_v56, %s2530_s7  ;;  %v947_v30 = vsel %vm3374_vm7, 0, %v3381_v32  ;;  %v1107_v44 = vsel %vm1097_vm12, %v1104_v36, %v1106_v7  ;;  %v1111_v20 = vsel %vm1097_vm12, %v1108_v52, %v1110_v35  ;;  %v4768_v7 = vld [vmem:[#allocation11_spill] sm:$0xff] }
 0x13b   : > { %v1112_v8 = vshll.u32 %v1072_v10, 8  ;;  %v943_v58 = vsel %vm860_vm0, %v942_v5, %v941_v16  ;;  %v1047_v24 = vsub.s32 4, %v1023_v42  ;;  %v1100_v59 = vsel %vm1096_vm10, %v1080_v49, %v1083_v19 }
 0x13c   : > { %v2324_v14 = vmin.u32 %v1027_v62, %v3400_v15  ;;  %v946_v32 = vsel %vm3374_vm7, %v2641_v2, %v943_v58  ;;  %v1102_v38 = vsel %vm1098_vm11, %v1086_v48, %v1101_v4  ;;  %v3442_v41 = vand.u32 31, %v3318_v57  ;;  %v4769_v62 = vld [vmem:[#allocation9_spill] sm:$0xff] }
 0x13d   : > { %v3434_v61 = vmul.u32.u64.low %v1112_v8, %v1111_v20  ;;  %v3435_v43 = vmul.u32.u64.high %v1112_v8, %v1111_v20, %v3434_v61  ;;  %2467 = vcosq.f32 %v946_v32  ;;  %vm963_vm13 = vcmp.lt.s32.totalorder %v2636_v63, 0 }
 0x13e   : > { %v1029_v10 = vclz %v2324_v14  ;;  %v3437_v34 = vmul.u32.u64.low %v1112_v8, %v1107_v44  ;;  %v3438_v13 = vmul.u32.u64.high %v1112_v8, %v1107_v44, %v3437_v34  ;;  %2469 = vsinq.f32 %v946_v32 }
 0x13f   : > { %v1167_v6 = vand.u32 2147483647, %v2653_v11  ;;  %v3449_v19 = vsel %vm1487_vm9, %v3214_v18, 0  ;;  %v3453_v53 = vsel %vm963_vm13, %v1047_v24, %v1023_v42  ;;  %v1103_v22 = vsel %vm1097_vm12, %v1100_v59, %v1102_v38 }
 0x140   : > { %v2325_v48 = vadd.s32 4294967294, %v1029_v10  ;;  %v3458_v47 = vadd.s32 1, %v3327_v21  ;;  %v3462_v27 = vshrl.u32 %v1685_v3, 23  ;;  %v3464_v36 = vand.u32 3, %v947_v30 }
 0x141   : > { %vm1121_vm14 = vc.u32 %v3435_v43, %v3437_v34  ;;  %vm3470_vm15 = vcmp.le.f32.partialorder %v961_v45, 0.7853982  ;;  %v1017_v50 = vadd.s32 %v3322_v40, %v3313_v17  ;;  %v1122_v21 = vadd.s32 1, %v3438_v13 }
 0x142   : > { %vm2326_vm0 = vcmp.lt.s32.totalorder %v2325_v48, 0  ;;  %v1050_v3 = vsel %vm3470_vm15, 0, %v3453_v53  ;;  %v1119_v52 = vmul.u32 %v1112_v8, %v1103_v22  ;;  %v3482_v55 = vand.u32 8388607, %v1167_v6 }
 0x143   : > { %v1032_v42 = vsel %vm2326_vm0, 0, %v2325_v48  ;;  %v1123_v16 = vsel %vm1121_vm14, %v1122_v21, %v3438_v13  ;;  %v1185_v17 = vshrl.u32 %v4754_v51, %v4768_v7  ;;  %vm956_vm1 = vcmp.eq.s32.totalorder %v3464_v36, 2 }
 0x144   : > { %v1033_v45 = vsub.s32 32, %v1032_v42  ;;  %v1037_v9 = vsub.s32 4294967266, %v1032_v42  ;;  %v1034_v40 = vshll.u32 %v3400_v15, %v1032_v42  ;;  %v1124_v26 = vadd.s32 %v1123_v16, %v1119_v52 }
 0x145   : > { %v1188_v49 = vshrl.u32 %v4748_v60, %v4768_v7  ;;  %v1191_v35 = vshrl.u32 %v4742_v25, %v4768_v7  ;;  %vm953_vm2 = vcmp.eq.s32.totalorder %v3464_v36, 0  ;;  %v1193_v4 = vshll.u32 %v4742_v25, %v4769_v62 }
 0x146   : > { %v1035_v56 = vshrl.u32 %v1017_v50, %v1033_v45  ;;  %v1038_v5 = vadd.s32 127, %v1037_v9  ;;  %v1194_v30 = vshrl.u32 %v4743_v1, %v4768_v7  ;;  %vm952_vm3 = vcmp.lt.s32.totalorder %v3464_v36, 2  ;;  %v4770_v50 = vld [vmem:[#allocation10_spill] sm:$0xff] }
 0x147   : > { %v1125_v15 = vadd.s32 536870912, %v1124_v26  ;;  %v1184_v44 = vshll.u32 %v4752_v29, %v4769_v62  ;;  %v1190_v20 = vshll.u32 %v4748_v60, %v4769_v62  ;;  %v1197_v8 = vshrl.u32 %v4744_v46, %v4768_v7 }
 0x148   : > { %vm950_vm4 = vweird.f32 %v2641_v2  ;;  %v1036_v58 = vor.u32 %v1035_v56, %v1034_v40  ;;  %v1039_v14 = vshll.u32 %v1038_v5, 23  ;;  %v1187_v24 = vshll.u32 %v4754_v51, %v4769_v62 }
 0x149   : > { %v1195_v59 = vor.u32 %v1194_v30, %v1193_v4  ;;  %v3508_v32 = vshrl.u32 %v1125_v15, 30  ;;  %v1183_v38 = vshrl.u32 %v4752_v29, %v4768_v7  ;;  %v1192_v61 = vor.u32 %v1191_v35, %v1190_v20 }
 0x14a   : > { %v1196_v10 = vshll.u32 %v4743_v1, %v4769_v62  ;;  %v1040_v13 = vor.u32 4788187, %v1039_v14  ;;  %v1186_v48 = vor.u32 %v1185_v17, %v1184_v44  ;;  %v1189_v22 = vor.u32 %v1188_v49, %v1187_v24  ;;  %v2468_v21 = vpop.eup %2467 }
 0x14b   : > { %vm1202_vm5 = vcmp.lt.s32.totalorder %v4770_v50, 4  ;;  %v1127_v42 = vshll.u32 %v3508_v32, 30  ;;  %v1175_v52 = vor.u32 8388608, %v3482_v55  ;;  %v2470_v16 = vpop.eup %2469  ;;  %v957_v7 = vxor.u32 2147483648, %v2468_v21 }
 0x14c   : > { %v1198_v45 = vor.u32 %v1197_v8, %v1196_v10  ;;  %v1208_v9 = vsel %vm1202_vm5, %v1195_v59, 920167782  ;;  %v1041_v40 = vand.u32 2147483647, %v1040_v13  ;;  %v1043_v35 = vcvt.s32.f32 %v1036_v58 }
 0x14d   : > { %vm1199_vm6 = vcmp.lt.s32.totalorder %v4770_v50, 1  ;;  %v954_v56 = vxor.u32 2147483648, %v2470_v16  ;;  %v3520_v17 = vsub.s32 %v1124_v26, %v1127_v42  ;;  %vm1201_vm7 = vcmp.lt.s32.totalorder %v4770_v50, 3 }
 0x14e   : > { %v1204_v49 = vsel %vm1202_vm5, %v1192_v61, 2102212464  ;;  %v958_v55 = vsel %vm956_vm1, %v957_v7, %v2470_v16  ;;  %v1044_v5 = vmul.f32 %v1043_v35, %v1041_v40  ;;  %v1207_v62 = vsel %vm1199_vm6, %v1186_v48, %v1189_v22 }
 0x14f   : > { %v1209_v4 = vsel %vm1201_vm7, %v1192_v61, %v1208_v9  ;;  %v955_v30 = vsel %vm953_vm2, %v2468_v21, %v954_v56  ;;  %v1130_v26 = vsub.s32 0, %v3520_v17  ;;  %v1211_v15 = vsel %vm1199_vm6, %v1189_v22, %v1192_v61  ;;  %v4773_v56 = vld [vmem:[#allocation3_spill] sm:$0xff] }
 0x150   : > { %v1212_v44 = vsel %vm1202_vm5, %v1198_v45, 1326507024  ;;  %v959_v20 = vsel %vm952_vm3, %v955_v30, %v958_v55  ;;  %v1045_v8 = vxor.u32 2147483648, %v1044_v5  ;;  %vm1200_vm8 = vcmp.lt.s32.totalorder %v4770_v50, 2 }
 0x151   : > { %v1213_v58 = vsel %vm1201_vm7, %v1195_v59, %v1212_v44  ;;  %v960_v14 = vsel %vm950_vm4, nan, %v959_v20  ;;  %v2328_v24 = vmin.u32 %v1130_v26, %v3520_v17  ;;  %v1210_v61 = vsel %vm1200_vm8, %v1207_v62, %v1209_v4 }
 0x152   : > { %v1215_v10 = vshll.u32 %v1175_v52, 8  ;;  %2151 = vrot.lane.b32.xlu0 %v960_v14, %s2530_s7  ;;  %v1046_v36 = vsel %vm963_vm13, %v1045_v8, %v1044_v5  ;;  %v1203_v13 = vsel %vm1199_vm6, %v1183_v38, %v1186_v48  ;;  %v1205_v59 = vsel %vm1201_vm7, %v1189_v22, %v1204_v49 }
 0x153   : > { %v1214_v2 = vsel %vm1200_vm8, %v1211_v15, %v1213_v58  ;;  %v1049_v21 = vsel %vm3470_vm15, %v2636_v63, %v1046_v36  ;;  %v1132_v42 = vclz %v2328_v24  ;;  %v1150_v9 = vsub.s32 4, %v3508_v32 }
 0x154   : > { %v3560_v52 = vmul.u32.u64.low %v1215_v10, %v1214_v2  ;;  %v3561_v45 = vmul.u32.u64.high %v1215_v10, %v1214_v2, %v3560_v52  ;;  %2471 = vcosq.f32 %v1049_v21  ;;  %v3569_v38 = vand.u32 31, %v3449_v19 }
 0x155   : > { %v3564_v16 = vmul.u32.u64.low %v1215_v10, %v1210_v61  ;;  %v3565_v7 = vmul.u32.u64.high %v1215_v10, %v1210_v61, %v3564_v16  ;;  %2473 = vsinq.f32 %v1049_v21  ;;  %v2329_v48 = vadd.s32 4294967294, %v1132_v42 }
 0x156   : > { %v1206_v22 = vsel %vm1200_vm8, %v1203_v13, %v1205_v59  ;;  %v3574_v40 = vadd.s32 4294967169, %v3462_v27  ;;  %vm3578_vm9 = vcmp.le.f32.partialorder %v1064_v33, 0.7853982  ;;  %vm1066_vm10 = vcmp.lt.s32.totalorder %v2661_v23, 0 }
 0x157   : > { %v1270_v49 = vand.u32 2147483647, %v4773_v56  ;;  %v3588_v55 = vand.u32 3, %v1050_v3  ;;  %v1120_v27 = vadd.s32 %v3437_v34, %v3435_v43  ;;  %vm2330_vm11 = vcmp.lt.s32.totalorder %v2329_v48, 0 }
 0x158   : > { %vm1224_vm12 = vc.u32 %v3561_v45, %v3564_v16  ;;  %v1135_v33 = vsel %vm2330_vm11, 0, %v2329_v48  ;;  %v3597_v50 = vsel %vm1066_vm10, %v1150_v9, %v3508_v32  ;;  %v1222_v5 = vmul.u32 %v1215_v10, %v1206_v22 }
 0x159   : > { %v1225_v18 = vadd.s32 1, %v3565_v7  ;;  %v1136_v62 = vsub.s32 32, %v1135_v33  ;;  %v1140_v53 = vsub.s32 4294967266, %v1135_v33  ;;  %v1287_v3 = vshll.u32 %v4752_v29, %v3211_v12 }
 0x15a   : > { %v1288_v43 = vshrl.u32 %v4754_v51, %v3333_v54  ;;  %v1277_v4 = vand.u32 8388607, %v1270_v49  ;;  %v1290_v32 = vshll.u32 %v4754_v51, %v3211_v12  ;;  %v1291_v30 = vshrl.u32 %v4748_v60, %v3333_v54 }
 0x15b   : > { %v1226_v34 = vsel %vm1224_vm12, %v1225_v18, %v3565_v7  ;;  %vm1059_vm13 = vcmp.eq.s32.totalorder %v3588_v55, 2  ;;  %v1137_v26 = vshll.u32 %v3520_v17, %v1135_v33  ;;  %v1138_v15 = vshrl.u32 %v1120_v27, %v1136_v62 }
 0x15c   : > { %v1141_v44 = vadd.s32 127, %v1140_v53  ;;  %v1227_v20 = vadd.s32 %v1226_v34, %v1222_v5  ;;  %vm1056_vm14 = vcmp.eq.s32.totalorder %v3588_v55, 0  ;;  %v1294_v8 = vshrl.u32 %v4742_v25, %v3333_v54 }
 0x15d   : > { %v1296_v58 = vshll.u32 %v4742_v25, %v3211_v12  ;;  %v1297_v14 = vshrl.u32 %v4743_v1, %v3333_v54  ;;  %v1299_v24 = vshll.u32 %v4743_v1, %v3211_v12  ;;  %vm1055_vm15 = vcmp.lt.s32.totalorder %v3588_v55, 2 }
 0x15e   : > { %v1139_v17 = vor.u32 %v1138_v15, %v1137_v26  ;;  %v1142_v61 = vshll.u32 %v1141_v44, 23  ;;  %v1228_v10 = vadd.s32 536870912, %v1227_v20  ;;  %v1300_v36 = vshrl.u32 %v4744_v46, %v3333_v54 }
 0x15f   : > { %vm1053_vm0 = vweird.f32 %v2636_v63  ;;  %v1289_v13 = vor.u32 %v1288_v43, %v1287_v3  ;;  %v1292_v59 = vor.u32 %v1291_v30, %v1290_v32  ;;  %v1293_v2 = vshll.u32 %v4748_v60, %v3211_v12 }
 0x160   : > { %v1298_v21 = vor.u32 %v1297_v14, %v1296_v58  ;;  %v1143_v42 = vor.u32 4788187, %v1142_v61  ;;  %v1153_v52 = vsel %vm3578_vm9, 0, %v3597_v50  ;;  %v1229_v9 = vshrl.u32 %v1228_v10, 30 }
 0x161   : > { %v1301_v7 = vor.u32 %v1300_v36, %v1299_v24  ;;  %v1278_v48 = vor.u32 8388608, %v1277_v4  ;;  %v1286_v22 = vshrl.u32 %v4752_v29, %v3333_v54  ;;  %v1295_v27 = vor.u32 %v1294_v8, %v1293_v2  ;;  %v2472_v33 = vpop.eup %2471 }
 0x162   : > { %vm1302_vm1 = vcmp.lt.s32.totalorder %v3206_v39, 1  ;;  %v1144_v5 = vand.u32 2147483647, %v1143_v42  ;;  %v1146_v18 = vcvt.s32.f32 %v1139_v17  ;;  %v1230_v62 = vshll.u32 %v1229_v9, 30  ;;  %v2474_v12 = vpop.eup %2473 }
 0x163   : > { %vm1305_vm2 = vcmp.lt.s32.totalorder %v3206_v39, 4  ;;  %v1060_v53 = vxor.u32 2147483648, %v2472_v33  ;;  %vm1304_vm3 = vcmp.lt.s32.totalorder %v3206_v39, 3  ;;  %v1310_v50 = vsel %vm1302_vm1, %v1289_v13, %v1292_v59 }
 0x164   : > { %v1311_v3 = vsel %vm1305_vm2, %v1298_v21, 920167782  ;;  %v1057_v54 = vxor.u32 2147483648, %v2474_v12  ;;  %v1147_v43 = vmul.f32 %v1146_v18, %v1144_v5  ;;  %v3640_v34 = vsub.s32 %v1227_v20, %v1230_v62  ;;  %v4775_v18 = vld [vmem:[#allocation7_spill] sm:$0xff] }
 0x165   : > { %v1315_v4 = vsel %vm1305_vm2, %v1301_v7, 1326507024  ;;  %v1061_v32 = vsel %vm1059_vm13, %v1060_v53, %v2474_v12  ;;  %vm1303_vm4 = vcmp.lt.s32.totalorder %v3206_v39, 2  ;;  %v1312_v30 = vsel %vm1304_vm3, %v1295_v27, %v1311_v3 }
 0x166   : > { %v1314_v26 = vsel %vm1302_vm1, %v1292_v59, %v1295_v27  ;;  %v1058_v15 = vsel %vm1056_vm14, %v2472_v33, %v1057_v54  ;;  %v1148_v44 = vxor.u32 2147483648, %v1147_v43  ;;  %v1233_v20 = vsub.s32 0, %v3640_v34 }
 0x167   : > { %v1307_v8 = vsel %vm1305_vm2, %v1295_v27, 2102212464  ;;  %v1062_v58 = vsel %vm1055_vm15, %v1058_v15, %v1061_v32  ;;  %v1306_v14 = vsel %vm1302_vm1, %v1286_v22, %v1289_v13  ;;  %v1313_v24 = vsel %vm1303_vm4, %v1310_v50, %v1312_v30  ;;  %v4774_v27 = vld [vmem:[#allocation8_spill] sm:$0xff]  ;;  %v4778_v15 = vld [vmem:[#allocation2_spill] sm:$0xff] }
 0x168   : > { %v1316_v17 = vsel %vm1304_vm3, %v1298_v21, %v1315_v4  ;;  %v1063_v61 = vsel %vm1053_vm0, nan, %v1062_v58  ;;  %v1149_v10 = vsel %vm1066_vm10, %v1148_v44, %v1147_v43  ;;  %v2332_v36 = vmin.u32 %v1233_v20, %v3640_v34 }
 0x169   : > { %v1318_v2 = vshll.u32 %v1278_v48, 8  ;;  %2153 = vrot.lane.b32.xlu1 %v1063_v61, %s2530_s7  ;;  %v1152_v55 = vsel %vm3578_vm9, %v2661_v23, %v1149_v10  ;;  %v1253_v13 = vsub.s32 4, %v1229_v9  ;;  %v1308_v42 = vsel %vm1304_vm3, %v1292_v59, %v1307_v8 }
 0x16a   : > { %v1317_v63 = vsel %vm1303_vm4, %v1314_v26, %v1316_v17  ;;  %2475 = vcosq.f32 %v1152_v55  ;;  %v1235_v21 = vclz %v2332_v36  ;;  %v1891_v48 = vand.u32 2139095040, %v4774_v27 }
 0x16b   : > { %v3677_v7 = vmul.u32.u64.low %v1318_v2, %v1317_v63  ;;  %v3678_v22 = vmul.u32.u64.high %v1318_v2, %v1317_v63, %v3677_v7  ;;  %2477 = vsinq.f32 %v1152_v55  ;;  %v3686_v35 = vsub.s32 32, %v3442_v41 }
 0x16c   : > { %v3681_v33 = vmul.u32.u64.low %v1318_v2, %v1313_v24  ;;  %v3682_v5 = vmul.u32.u64.high %v1318_v2, %v1313_v24, %v3681_v33  ;;  %v3689_v59 = vshrl.u32 %v3449_v19, 5  ;;  %v1994_v62 = vand.u32 2139095040, %v4775_v18 }
 0x16d   : > { %v2333_v12 = vadd.s32 4294967294, %v1235_v21  ;;  %v3693_v53 = vsub.s32 32, %v3569_v38  ;;  %v3695_v50 = vand.u32 3, %v1153_v52  ;;  %vm1169_vm5 = vcmp.lt.s32.totalorder %v2653_v11, 0 }
 0x16e   : > { %v1309_v3 = vsel %vm1303_vm4, %v1306_v14, %v1308_v42  ;;  %v3701_v54 = vadd.s32 1, %v3574_v40  ;;  %v3705_v19 = vsel %vm1169_vm5, %v1253_v13, %v1229_v9  ;;  %vm1327_vm7 = vc.u32 %v3678_v22, %v3681_v33 }
 0x16f   : > { %vm2334_vm6 = vcmp.lt.s32.totalorder %v2333_v12, 0  ;;  %v3709_v43 = vshrl.u32 %v1891_v48, 23  ;;  %vm3713_vm8 = vcmp.le.f32.partialorder %v1167_v6, 0.7853982  ;;  %v1328_v40 = vadd.s32 1, %v3682_v5 }
 0x170   : > { %v1238_v39 = vsel %vm2334_vm6, 0, %v2333_v12  ;;  %v1223_v4 = vadd.s32 %v3564_v16, %v3561_v45  ;;  %v1325_v30 = vmul.u32 %v1318_v2, %v1309_v3  ;;  %vm1162_vm9 = vcmp.eq.s32.totalorder %v3695_v50, 2 }
 0x171   : > { %v1239_v32 = vsub.s32 32, %v1238_v39  ;;  %v1243_v9 = vsub.s32 4294967266, %v1238_v39  ;;  %v1256_v26 = vsel %vm3713_vm8, 0, %v3705_v19  ;;  %v1329_v6 = vsel %vm1327_vm7, %v1328_v40, %v3682_v5 }
 0x172   : > { %v1373_v44 = vand.u32 2147483647, %v4778_v15  ;;  %v1391_v20 = vshrl.u32 %v4754_v51, %v3204_v31  ;;  %vm1159_vm10 = vcmp.eq.s32.totalorder %v3695_v50, 0  ;;  %v1240_v45 = vshll.u32 %v3640_v34, %v1238_v39 }
 0x173   : > { %v1241_v16 = vshrl.u32 %v1223_v4, %v1239_v32  ;;  %v1244_v8 = vadd.s32 127, %v1243_v9  ;;  %v1330_v58 = vadd.s32 %v1329_v6, %v1325_v30  ;;  %vm1158_vm11 = vcmp.lt.s32.totalorder %v3695_v50, 2 }
 0x174   : > { %v1394_v14 = vshrl.u32 %v4748_v60, %v3204_v31  ;;  %v1397_v24 = vshrl.u32 %v4742_v25, %v3204_v31  ;;  %v1399_v17 = vshll.u32 %v4742_v25, %v2957_v28  ;;  %v1400_v61 = vshrl.u32 %v4743_v1, %v3204_v31 }
 0x175   : > { %vm1156_vm12 = vweird.f32 %v2661_v23  ;;  %v1242_v34 = vor.u32 %v1241_v16, %v1240_v45  ;;  %v1245_v10 = vshll.u32 %v1244_v8, 23  ;;  %v1331_v36 = vadd.s32 536870912, %v1330_v58 }
 0x176   : > { %v1390_v2 = vshll.u32 %v4752_v29, %v2957_v28  ;;  %v1393_v55 = vshll.u32 %v4754_v51, %v2957_v28  ;;  %v1396_v13 = vshll.u32 %v4748_v60, %v2957_v28  ;;  %v1401_v42 = vor.u32 %v1400_v61, %v1399_v17 }
 0x177   : > { %v1403_v63 = vshrl.u32 %v4744_v46, %v3204_v31  ;;  %v1246_v21 = vor.u32 4788187, %v1245_v10  ;;  %v3748_v7 = vshrl.u32 %v1331_v36, 30  ;;  %v1380_v48 = vand.u32 8388607, %v1373_v44  ;;  %v2476_v12 = vpop.eup %2475 }
 0x178   : > { %v1392_v5 = vor.u32 %v1391_v20, %v1390_v2  ;;  %vm1796_vm13 = vcmp.gt.s32.totalorder %v3458_v47, 0  ;;  %v1249_v3 = vcvt.s32.f32 %v1242_v34  ;;  %v1395_v39 = vor.u32 %v1394_v14, %v1393_v55  ;;  %v2478_v32 = vpop.eup %2477 }
 0x179   : > { %v1398_v40 = vor.u32 %v1397_v24, %v1396_v13  ;;  %v1402_v4 = vshll.u32 %v4743_v1, %v2957_v28  ;;  %v1163_v9 = vxor.u32 2147483648, %v2476_v12  ;;  %v1247_v30 = vand.u32 2147483647, %v1246_v21 }
 0x17a   : > { %v1333_v6 = vshll.u32 %v3748_v7, 30  ;;  %vm1408_vm14 = vcmp.lt.s32.totalorder %v2950_v37, 4  ;;  %vm1693_vm15 = vcmp.gt.s32.totalorder %v3701_v54, 0  ;;  %v1160_v45 = vxor.u32 2147483648, %v2478_v32 }
 0x17b   : > { %v1389_v20 = vshrl.u32 %v4752_v29, %v3204_v31  ;;  %v1404_v16 = vor.u32 %v1403_v63, %v1402_v4  ;;  %v1414_v8 = vsel %vm1408_vm14, %v1401_v42, 920167782  ;;  %v1164_v28 = vsel %vm1162_vm9, %v1163_v9, %v2478_v32 }
 0x17c   : > { %v1250_v14 = vmul.f32 %v1249_v3, %v1247_v30  ;;  %v3764_v24 = vsub.s32 %v1330_v58, %v1333_v6  ;;  %vm1405_vm0 = vcmp.lt.s32.totalorder %v2950_v37, 1  ;;  %v1161_v17 = vsel %vm1159_vm10, %v2476_v12, %v1160_v45 }
 0x17d   : > { %v1381_v61 = vor.u32 8388608, %v1380_v48  ;;  %vm1407_vm1 = vcmp.lt.s32.totalorder %v2950_v37, 3  ;;  %v1413_v31 = vsel %vm1405_vm0, %v1392_v5, %v1395_v39  ;;  %v1165_v34 = vsel %vm1158_vm11, %v1161_v17, %v1164_v28 }
 0x17e   : > { %v1251_v10 = vxor.u32 2147483648, %v1250_v14  ;;  %v1336_v36 = vsub.s32 0, %v3764_v24  ;;  %v1415_v58 = vsel %vm1407_vm1, %v1398_v40, %v1414_v8  ;;  %v1166_v2 = vsel %vm1156_vm12, nan, %v1165_v34 }
 0x17f   : > { %v1410_v55 = vsel %vm1408_vm14, %v1398_v40, 2102212464  ;;  %v1417_v13 = vsel %vm1405_vm0, %v1395_v39, %v1398_v40  ;;  %v1418_v63 = vsel %vm1408_vm14, %v1404_v16, 1326507024  ;;  %2155 = vrot.lane.b32.xlu0 %v1166_v2, %s2530_s7  ;;  %vm1406_vm2 = vcmp.lt.s32.totalorder %v2950_v37, 2 }
 0x180   : > { %v1252_v50 = vsel %vm1169_vm5, %v1251_v10, %v1250_v14  ;;  %v2336_v21 = vmin.u32 %v1336_v36, %v3764_v24  ;;  %v1409_v23 = vsel %vm1405_vm0, %v1389_v20, %v1392_v5  ;;  %v1416_v12 = vsel %vm1406_vm2, %v1413_v31, %v1415_v58 }
 0x181   : > { %v1255_v48 = vsel %vm3713_vm8, %v2653_v11, %v1252_v50  ;;  %v1419_v3 = vsel %vm1407_vm1, %v1401_v42, %v1418_v63  ;;  %v1421_v40 = vshll.u32 %v1381_v61, 8  ;;  %v1411_v32 = vsel %vm1407_vm1, %v1395_v39, %v1410_v55 }
 0x182   : > { %2479 = vcosq.f32 %v1255_v48  ;;  %v1338_v4 = vclz %v2336_v21  ;;  %v1420_v9 = vsel %vm1406_vm2, %v1417_v13, %v1419_v3  ;;  %v1356_v5 = vsub.s32 4, %v3748_v7 }
 0x183   : > { %2481 = vsinq.f32 %v1255_v48  ;;  %v3804_v30 = vmul.u32.u64.low %v1421_v40, %v1420_v9  ;;  %v3805_v6 = vmul.u32.u64.high %v1421_v40, %v1420_v9, %v3804_v30  ;;  %v3810_v45 = vsel %vm1796_vm13, %v3458_v47, 0  ;;  %v4779_v47 = vld [vmem:[#allocation5_spill] sm:$0xff] }
 0x184   : > { %v2337_v42 = vadd.s32 4294967294, %v1338_v4  ;;  %v3812_v20 = vmul.u32.u64.low %v1421_v40, %v1416_v12  ;;  %v3813_v16 = vmul.u32.u64.high %v1421_v40, %v1416_v12, %v3812_v20  ;;  %v3818_v39 = vshrl.u32 %v1994_v62, 23 }
 0x185   : > { %v3824_v8 = vand.u32 3, %v1256_v26  ;;  %v1412_v28 = vsel %vm1406_vm2, %v1409_v23, %v1411_v32  ;;  %v1476_v14 = vand.u32 2147483647, %v4779_v47  ;;  %v3832_v17 = vsel %vm1693_vm15, %v3701_v54, 0 }
 0x186   : > { %v3835_v61 = vadd.s32 4294967169, %v3709_v43  ;;  %vm1272_vm3 = vcmp.lt.s32.totalorder %v4773_v56, 0  ;;  %vm2338_vm4 = vcmp.lt.s32.totalorder %v2337_v42, 0  ;;  %v1326_v62 = vadd.s32 %v3681_v33, %v3678_v22 }
 0x187   : > { %v1341_v19 = vsel %vm2338_vm4, 0, %v2337_v42  ;;  %v3843_v37 = vsel %vm1272_vm3, %v1356_v5, %v3748_v7  ;;  %vm1430_vm5 = vc.u32 %v3805_v6, %v3812_v20  ;;  %v1428_v26 = vmul.u32 %v1421_v40, %v1412_v28 }
 0x188   : > { %v1342_v54 = vsub.s32 32, %v1341_v19  ;;  %v1346_v52 = vsub.s32 4294967266, %v1341_v19  ;;  %v1431_v43 = vadd.s32 1, %v3813_v16  ;;  %vm1265_vm6 = vcmp.eq.s32.totalorder %v3824_v8, 2 }
 0x189   : > { %v3851_v31 = vand.u32 8388607, %v1476_v14  ;;  %v1493_v22 = vshll.u32 %v4752_v29, %v3569_v38  ;;  %v1494_v33 = vshrl.u32 %v4754_v51, %v3693_v53  ;;  %v1497_v7 = vshrl.u32 %v4748_v60, %v3693_v53 }
 0x18a   : > { %vm1262_vm7 = vcmp.eq.s32.totalorder %v3824_v8, 0  ;;  %v1343_v34 = vshll.u32 %v3764_v24, %v1341_v19  ;;  %v1344_v10 = vshrl.u32 %v1326_v62, %v1342_v54  ;;  %v1347_v36 = vadd.s32 127, %v1346_v52 }
 0x18b   : > { %v1432_v58 = vsel %vm1430_vm5, %v1431_v43, %v3813_v16  ;;  %vm1261_vm8 = vcmp.lt.s32.totalorder %v3824_v8, 2  ;;  %v1500_v55 = vshrl.u32 %v4742_v25, %v3693_v53  ;;  %v1502_v13 = vshll.u32 %v4742_v25, %v3569_v38 }
 0x18c   : > { %v1433_v2 = vadd.s32 %v1432_v58, %v1428_v26  ;;  %v1503_v63 = vshrl.u32 %v4743_v1, %v3693_v53  ;;  %vm1259_vm9 = vweird.f32 %v2653_v11  ;;  %v1345_v50 = vor.u32 %v1344_v10, %v1343_v34 }
 0x18d   : > { %v1348_v24 = vshll.u32 %v1347_v36, 23  ;;  %v1496_v21 = vshll.u32 %v4754_v51, %v3569_v38  ;;  %v1506_v23 = vshrl.u32 %v4744_v46, %v3693_v53  ;;  %v1492_v12 = vshrl.u32 %v4752_v29, %v3693_v53 }
 0x18e   : > { %v1434_v48 = vadd.s32 536870912, %v1433_v2  ;;  %v1499_v3 = vshll.u32 %v4748_v60, %v3569_v38  ;;  %v1504_v40 = vor.u32 %v1503_v63, %v1502_v13  ;;  %vm3880_vm10 = vcmp.le.f32.partialorder %v1270_v49, 0.7853982 }
 0x18f   : > { %v1349_v32 = vor.u32 4788187, %v1348_v24  ;;  %v1495_v9 = vor.u32 %v1494_v33, %v1493_v22  ;;  %v1498_v5 = vor.u32 %v1497_v7, %v1496_v21  ;;  %v1505_v30 = vshll.u32 %v4743_v1, %v3569_v38  ;;  %v2480_v42 = vpop.eup %2479 }
 0x190   : > { %v1352_v16 = vcvt.s32.f32 %v1345_v50  ;;  %v3886_v28 = vshrl.u32 %v1434_v48, 30  ;;  %v1501_v53 = vor.u32 %v1500_v55, %v1499_v3  ;;  %vm1511_vm11 = vcmp.lt.s32.totalorder %v3689_v59, 4  ;;  %v2482_v62 = vpop.eup %2481 }
 0x191   : > { %v1266_v19 = vxor.u32 2147483648, %v2480_v42  ;;  %v1350_v54 = vand.u32 2147483647, %v1349_v32  ;;  %v1507_v49 = vor.u32 %v1506_v23, %v1505_v30  ;;  %v1517_v52 = vsel %vm1511_vm11, %v1504_v40, 920167782 }
 0x192   : > { %v1263_v26 = vxor.u32 2147483648, %v2482_v62  ;;  %v1436_v43 = vshll.u32 %v3886_v28, 30  ;;  %v1484_v22 = vor.u32 8388608, %v3851_v31  ;;  %vm1508_vm12 = vcmp.lt.s32.totalorder %v3689_v59, 1 }
 0x193   : > { %v1267_v38 = vsel %vm1265_vm6, %v1266_v19, %v2482_v62  ;;  %v1353_v33 = vmul.f32 %v1352_v16, %v1350_v54  ;;  %vm1510_vm13 = vcmp.lt.s32.totalorder %v3689_v59, 3  ;;  %v1516_v7 = vsel %vm1508_vm12, %v1495_v9, %v1498_v5 }
 0x194   : > { %v1264_v34 = vsel %vm1262_vm7, %v2480_v42, %v1263_v26  ;;  %v3901_v10 = vsub.s32 %v1433_v2, %v1436_v43  ;;  %v1518_v36 = vsel %vm1510_vm13, %v1501_v53, %v1517_v52  ;;  %v1520_v31 = vsel %vm1508_vm12, %v1498_v5, %v1501_v53  ;;  %v4782_v52 = vld [vmem:[#allocation4_spill] sm:$0xff] }
 0x195   : > { %v1268_v58 = vsel %vm1261_vm8, %v1264_v34, %v1267_v38  ;;  %v1354_v55 = vxor.u32 2147483648, %v1353_v33  ;;  %v1513_v13 = vsel %vm1511_vm11, %v1501_v53, 2102212464  ;;  %v1521_v63 = vsel %vm1511_vm11, %v1507_v49, 1326507024 }
 0x196   : > { %v1269_v2 = vsel %vm1259_vm9, nan, %v1268_v58  ;;  %v1439_v50 = vsub.s32 0, %v3901_v10  ;;  %vm1509_vm14 = vcmp.lt.s32.totalorder %v3689_v59, 2  ;;  %v1522_v24 = vsel %vm1510_vm13, %v1504_v40, %v1521_v63 }
 0x197   : > { %2157 = vrot.lane.b32.xlu1 %v1269_v2, %s2530_s7  ;;  %v1355_v8 = vsel %vm1272_vm3, %v1354_v55, %v1353_v33  ;;  %v1519_v21 = vsel %vm1509_vm14, %v1516_v7, %v1518_v36  ;;  %v1523_v23 = vsel %vm1509_vm14, %v1520_v31, %v1522_v24  ;;  %v1524_v11 = vshll.u32 %v1484_v22, 8 }
 0x198   : > { %v1358_v48 = vsel %vm3880_vm10, %v4773_v56, %v1355_v8  ;;  %v2340_v3 = vmin.u32 %v1439_v50, %v3901_v10  ;;  %v1512_v40 = vsel %vm1508_vm12, %v1492_v12, %v1495_v9  ;;  %v1514_v32 = vsel %vm1510_vm13, %v1498_v5, %v1513_v13 }
 0x199   : > { %v1359_v30 = vsel %vm3880_vm10, 0, %v3843_v37  ;;  %2483 = vcosq.f32 %v1358_v48  ;;  %v3937_v42 = vmul.u32.u64.low %v1524_v11, %v1523_v23  ;;  %v3938_v16 = vmul.u32.u64.high %v1524_v11, %v1523_v23, %v3937_v42 }
 0x19a   : > { %2485 = vsinq.f32 %v1358_v48  ;;  %v1441_v53 = vclz %v2340_v3  ;;  %v3940_v62 = vmul.u32.u64.low %v1524_v11, %v1519_v21  ;;  %v3941_v19 = vmul.u32.u64.high %v1524_v11, %v1519_v21, %v3940_v62 }
 0x19b   : > { %v3945_v54 = vshrl.u32 %v3318_v57, 5  ;;  %v3948_v12 = vshrl.u32 %v3810_v45, 5  ;;  %v3951_v9 = vand.u32 31, %v3810_v45  ;;  %v1515_v37 = vsel %vm1509_vm14, %v1512_v40, %v1514_v32 }
 0x19c   : > { %v3956_v4 = vadd.s32 4294967169, %v3818_v39  ;;  %v3958_v5 = vand.u32 3, %v1359_v30  ;;  %v2341_v49 = vadd.s32 4294967294, %v1441_v53  ;;  %v1579_v26 = vand.u32 2147483647, %v4782_v52 }
 0x19d   : > { %v3962_v57 = vand.u32 31, %v3832_v17  ;;  %v3965_v43 = vadd.s32 1, %v3835_v61  ;;  %vm1533_vm15 = vc.u32 %v3938_v16, %v3940_v62  ;;  %v1597_v59 = vshrl.u32 %v4754_v51, %v3686_v35 }
 0x19e   : > { %v1429_v45 = vadd.s32 %v3812_v20, %v3805_v6  ;;  %vm2342_vm0 = vcmp.lt.s32.totalorder %v2341_v49, 0  ;;  %v1531_v39 = vmul.u32 %v1524_v11, %v1515_v37  ;;  %v1534_v22 = vadd.s32 1, %v3941_v19 }
 0x19f   : > { %v1444_v38 = vsel %vm2342_vm0, 0, %v2341_v49  ;;  %v1596_v33 = vshll.u32 %v4752_v29, %v3442_v41  ;;  %v1599_v61 = vshll.u32 %v4754_v51, %v3442_v41  ;;  %v1600_v7 = vshrl.u32 %v4748_v60, %v3686_v35 }
 0x1a0   : > { %vm1368_vm1 = vcmp.eq.s32.totalorder %v3958_v5, 2  ;;  %v1445_v34 = vsub.s32 32, %v1444_v38  ;;  %v1449_v36 = vsub.s32 4294967266, %v1444_v38  ;;  %v1535_v6 = vsel %vm1533_vm15, %v1534_v22, %v3941_v19 }
 0x1a1   : > { %v1586_v20 = vand.u32 8388607, %v1579_v26  ;;  %vm1365_vm2 = vcmp.eq.s32.totalorder %v3958_v5, 0  ;;  %v1446_v31 = vshll.u32 %v3901_v10, %v1444_v38  ;;  %v1536_v58 = vadd.s32 %v1535_v6, %v1531_v39 }
 0x1a2   : > { %v1598_v55 = vor.u32 %v1597_v59, %v1596_v33  ;;  %v1603_v13 = vshrl.u32 %v4742_v25, %v3686_v35  ;;  %vm1364_vm3 = vcmp.lt.s32.totalorder %v3958_v5, 2  ;;  %v1447_v63 = vshrl.u32 %v1429_v45, %v1445_v34 }
 0x1a3   : > { %v1450_v2 = vadd.s32 127, %v1449_v36  ;;  %v1605_v50 = vshll.u32 %v4742_v25, %v3442_v41  ;;  %v1606_v24 = vshrl.u32 %v4743_v1, %v3686_v35  ;;  %vm1362_vm4 = vweird.f32 %v4773_v56 }
 0x1a4   : > { %v1537_v8 = vadd.s32 536870912, %v1536_v58  ;;  %v1601_v21 = vor.u32 %v1600_v7, %v1599_v61  ;;  %v1602_v10 = vshll.u32 %v4748_v60, %v3442_v41  ;;  %v1609_v23 = vshrl.u32 %v4744_v46, %v3686_v35 }
 0x1a5   : > { %vm1375_vm5 = vcmp.lt.s32.totalorder %v4778_v15, 0  ;;  %v1448_v11 = vor.u32 %v1447_v63, %v1446_v31  ;;  %v1451_v48 = vshll.u32 %v1450_v2, 23  ;;  %v1607_v3 = vor.u32 %v1606_v24, %v1605_v50 }
 0x1a6   : > { %v1608_v40 = vshll.u32 %v4743_v1, %v3442_v41  ;;  %v1459_v32 = vsub.s32 4, %v3886_v28  ;;  %v4002_v30 = vshrl.u32 %v1537_v8, 30  ;;  %v1587_v42 = vor.u32 8388608, %v1586_v20  ;;  %v2484_v19 = vpop.eup %2483 }
 0x1a7   : > { %v1604_v53 = vor.u32 %v1603_v13, %v1602_v10  ;;  %vm4006_vm6 = vcmp.le.f32.partialorder %v1373_v44, 0.7853982  ;;  %v1452_v49 = vor.u32 4788187, %v1451_v48  ;;  %vm1611_vm7 = vcmp.lt.s32.totalorder %v3945_v54, 1  ;;  %v2486_v41 = vpop.eup %2485 }
 0x1a8   : > { %v1610_v59 = vor.u32 %v1609_v23, %v1608_v40  ;;  %vm1613_vm8 = vcmp.lt.s32.totalorder %v3945_v54, 3  ;;  %v1369_v45 = vxor.u32 2147483648, %v2484_v19  ;;  %v1455_v39 = vcvt.s32.f32 %v1448_v11 }
 0x1a9   : > { %v1539_v22 = vshll.u32 %v4002_v30, 30  ;;  %vm1614_vm9 = vcmp.lt.s32.totalorder %v3945_v54, 4  ;;  %v1366_v38 = vxor.u32 2147483648, %v2486_v41  ;;  %v1453_v33 = vand.u32 2147483647, %v1452_v49 }
 0x1aa   : > { %v1619_v44 = vsel %vm1611_vm7, %v1598_v55, %v1601_v21  ;;  %v1620_v61 = vsel %vm1614_vm9, %v1607_v3, 920167782  ;;  %v1370_v7 = vsel %vm1368_vm1, %v1369_v45, %v2486_v41  ;;  %v1595_v36 = vshrl.u32 %v4752_v29, %v3686_v35 }
 0x1ab   : > { %v4020_v34 = vsub.s32 %v1536_v58, %v1539_v22  ;;  %v1621_v6 = vsel %vm1613_vm8, %v1604_v53, %v1620_v61  ;;  %v1367_v20 = vsel %vm1365_vm2, %v2484_v19, %v1366_v38  ;;  %v1456_v31 = vmul.f32 %v1455_v39, %v1453_v33 }
 0x1ac   : > { %vm1612_vm10 = vcmp.lt.s32.totalorder %v3945_v54, 2  ;;  %v1616_v13 = vsel %vm1614_vm9, %v1604_v53, 2102212464  ;;  %v1371_v63 = vsel %vm1364_vm3, %v1367_v20, %v1370_v7  ;;  %v1623_v2 = vsel %vm1611_vm7, %v1601_v21, %v1604_v53 }
 0x1ad   : > { %v1542_v58 = vsub.s32 0, %v4020_v34  ;;  %v1622_v35 = vsel %vm1612_vm10, %v1619_v44, %v1621_v6  ;;  %v1372_v50 = vsel %vm1362_vm4, nan, %v1371_v63  ;;  %v1457_v24 = vxor.u32 2147483648, %v1456_v31 }
 0x1ae   : > { %v1624_v8 = vsel %vm1614_vm9, %v1610_v59, 1326507024  ;;  %v1627_v10 = vshll.u32 %v1587_v42, 8  ;;  %2159 = vrot.lane.b32.xlu0 %v1372_v50, %s2530_s7  ;;  %v1460_v5 = vsel %vm1375_vm5, %v1459_v32, %v3886_v28  ;;  %v1615_v11 = vsel %vm1611_vm7, %v1595_v36, %v1598_v55 }
 0x1af   : > { %v2344_v23 = vmin.u32 %v1542_v58, %v4020_v34  ;;  %v1617_v56 = vsel %vm1613_vm8, %v1601_v21, %v1616_v13  ;;  %v1458_v48 = vsel %vm1375_vm5, %v1457_v24, %v1456_v31  ;;  %v1625_v40 = vsel %vm1613_vm8, %v1607_v3, %v1624_v8 }
 0x1b0   : > { %v4055_v42 = vmul.u32.u64.low %v1627_v10, %v1622_v35  ;;  %v4056_v53 = vmul.u32.u64.high %v1627_v10, %v1622_v35, %v4055_v42  ;;  %v1461_v28 = vsel %vm4006_vm6, %v4778_v15, %v1458_v48  ;;  %v1562_v55 = vsub.s32 4, %v4002_v30 }
 0x1b1   : > { %v1544_v32 = vclz %v2344_v23  ;;  %v1626_v21 = vsel %vm1612_vm10, %v1623_v2, %v1625_v40  ;;  %v1462_v19 = vsel %vm4006_vm6, 0, %v1460_v5  ;;  %2487 = vcosq.f32 %v1461_v28 }
 0x1b2   : > { %v4067_v49 = vmul.u32.u64.low %v1627_v10, %v1626_v21  ;;  %v4068_v3 = vmul.u32.u64.high %v1627_v10, %v1626_v21, %v4067_v49  ;;  %v4071_v59 = vshrl.u32 %v3832_v17, 5  ;;  %2489 = vsinq.f32 %v1461_v28 }
 0x1b3   : > { %v2345_v41 = vadd.s32 4294967294, %v1544_v32  ;;  %v1618_v45 = vsel %vm1612_vm10, %v1615_v11, %v1617_v56  ;;  %v1697_v39 = vsub.s32 32, %v3962_v57  ;;  %vm1899_vm11 = vcmp.gt.s32.totalorder %v3965_v43, 0 }
 0x1b4   : > { %vm1478_vm12 = vcmp.lt.s32.totalorder %v4779_v47, 0  ;;  %v1637_v37 = vadd.s32 1, %v4056_v53  ;;  %v4079_v22 = vand.u32 3, %v1462_v19  ;;  %vm4083_vm13 = vcmp.le.f32.partialorder %v1476_v14, 0.7853982 }
 0x1b5   : > { %vm2346_vm14 = vcmp.lt.s32.totalorder %v2345_v41, 0  ;;  %v4090_v54 = vsel %vm1478_vm12, %v1562_v55, %v4002_v30  ;;  %v1532_v38 = vadd.s32 %v3940_v62, %v3938_v16  ;;  %v1634_v44 = vmul.u32 %v1627_v10, %v1618_v45 }
 0x1b6   : > { %v1547_v33 = vsel %vm2346_vm14, 0, %v2345_v41  ;;  %vm1636_vm15 = vc.u32 %v4068_v3, %v4055_v42  ;;  %v1682_v36 = vand.u32 2147483647, %v2690_v0  ;;  %v4101_v6 = vsel %vm1899_vm11, %v3965_v43, 0 }
 0x1b7   : > { %v1548_v61 = vsub.s32 32, %v1547_v33  ;;  %v1552_v7 = vsub.s32 4294967266, %v1547_v33  ;;  %v1638_v14 = vsel %vm1636_vm15, %v1637_v37, %v4056_v53  ;;  %v1565_v16 = vsel %vm4083_vm13, 0, %v4090_v54 }
 0x1b8   : > { %v1639_v62 = vadd.s32 %v1638_v14, %v1634_v44  ;;  %v1700_v30 = vshrl.u32 %v4754_v51, %v1697_v39  ;;  %vm1471_vm0 = vcmp.eq.s32.totalorder %v4079_v22, 2  ;;  %v1549_v20 = vshll.u32 %v4020_v34, %v1547_v33 }
 0x1b9   : > { %v1550_v31 = vshrl.u32 %v1532_v38, %v1548_v61  ;;  %v1553_v13 = vadd.s32 127, %v1552_v7  ;;  %v1703_v63 = vshrl.u32 %v4748_v60, %v1697_v39  ;;  %vm1468_vm1 = vcmp.eq.s32.totalorder %v4079_v22, 0 }
 0x1ba   : > { %v1640_v58 = vadd.s32 536870912, %v1639_v62  ;;  %v1706_v43 = vshrl.u32 %v4742_v25, %v1697_v39  ;;  %v1708_v35 = vshll.u32 %v4742_v25, %v3962_v57  ;;  %v1709_v2 = vshrl.u32 %v4743_v1, %v1697_v39 }
 0x1bb   : > { %vm1467_vm2 = vcmp.lt.s32.totalorder %v4079_v22, 2  ;;  %v1551_v50 = vor.u32 %v1550_v31, %v1549_v20  ;;  %v1554_v24 = vshll.u32 %v1553_v13, 23  ;;  %v1689_v34 = vand.u32 8388607, %v1682_v36 }
 0x1bc   : > { %v1699_v8 = vshll.u32 %v4752_v29, %v3962_v57  ;;  %vm1465_vm3 = vweird.f32 %v4778_v15  ;;  %v1641_v10 = vshrl.u32 %v1640_v58, 30  ;;  %v1702_v5 = vshll.u32 %v4754_v51, %v3962_v57 }
 0x1bd   : > { %v1705_v23 = vshll.u32 %v4748_v60, %v3962_v57  ;;  %v1710_v11 = vor.u32 %v1709_v2, %v1708_v35  ;;  %v1555_v56 = vor.u32 4788187, %v1554_v24  ;;  %v1698_v48 = vshrl.u32 %v4752_v29, %v1697_v39 }
 0x1be   : > { %v1701_v40 = vor.u32 %v1700_v30, %v1699_v8  ;;  %v1712_v53 = vshrl.u32 %v4744_v46, %v1697_v39  ;;  %v1642_v28 = vshll.u32 %v1641_v10, 30  ;;  %v1704_v32 = vor.u32 %v1703_v63, %v1702_v5  ;;  %v2488_v21 = vpop.eup %2487 }
 0x1bf   : > { %v1707_v55 = vor.u32 %v1706_v43, %v1705_v23  ;;  %vm1717_vm4 = vcmp.lt.s32.totalorder %v4071_v59, 4  ;;  %v1556_v19 = vand.u32 2147483647, %v1555_v56  ;;  %v1558_v49 = vcvt.s32.f32 %v1551_v50  ;;  %v2490_v37 = vpop.eup %2489 }
 0x1c0   : > { %v1711_v41 = vshll.u32 %v4743_v1, %v3962_v57  ;;  %v1723_v45 = vsel %vm1717_vm4, %v1710_v11, 920167782  ;;  %v1472_v38 = vxor.u32 2147483648, %v2488_v21  ;;  %v4132_v33 = vsub.s32 %v1639_v62, %v1642_v28 }
 0x1c1   : > { %v1690_v44 = vor.u32 8388608, %v1689_v34  ;;  %vm1714_vm5 = vcmp.lt.s32.totalorder %v4071_v59, 1  ;;  %v1469_v39 = vxor.u32 2147483648, %v2490_v37  ;;  %v1559_v61 = vmul.f32 %v1558_v49, %v1556_v19  ;;  %v4787_v49 = vld [vmem:[#allocation6_spill] sm:$0xff] }
 0x1c2   : > { %v1713_v7 = vor.u32 %v1712_v53, %v1711_v41  ;;  %vm1716_vm6 = vcmp.lt.s32.totalorder %v4071_v59, 3  ;;  %v1473_v14 = vsel %vm1471_vm0, %v1472_v38, %v2490_v37  ;;  %v1645_v57 = vsub.s32 0, %v4132_v33 }
 0x1c3   : > { %v1722_v30 = vsel %vm1714_vm5, %v1701_v40, %v1704_v32  ;;  %v1724_v62 = vsel %vm1716_vm6, %v1707_v55, %v1723_v45  ;;  %v1470_v20 = vsel %vm1468_vm1, %v2488_v21, %v1469_v39  ;;  %v1560_v31 = vxor.u32 2147483648, %v1559_v61 }
 0x1c4   : > { %v1665_v13 = vsub.s32 4, %v1641_v10  ;;  %vm1715_vm7 = vcmp.lt.s32.totalorder %v4071_v59, 2  ;;  %v1474_v63 = vsel %vm1467_vm2, %v1470_v20, %v1473_v14  ;;  %v2348_v58 = vmin.u32 %v1645_v57, %v4132_v33 }
 0x1c5   : > { %v1719_v43 = vsel %vm1717_vm4, %v1707_v55, 2102212464  ;;  %v1726_v35 = vsel %vm1714_vm5, %v1704_v32, %v1707_v55  ;;  %v1475_v2 = vsel %vm1465_vm3, nan, %v1474_v63  ;;  %v1561_v50 = vsel %vm1478_vm12, %v1560_v31, %v1559_v61 }
 0x1c6   : > { %v1725_v24 = vsel %vm1715_vm7, %v1722_v30, %v1724_v62  ;;  %v1727_v22 = vsel %vm1717_vm4, %v1713_v7, 1326507024  ;;  %2161 = vrot.lane.b32.xlu1 %v1475_v2, %s2530_s7  ;;  %v1564_v34 = vsel %vm4083_vm13, %v4779_v47, %v1561_v50  ;;  %v1647_v8 = vclz %v2348_v58 }
 0x1c7   : > { %v1728_v15 = vsel %vm1716_vm6, %v1710_v11, %v1727_v22  ;;  %v1730_v5 = vshll.u32 %v1690_v44, 8  ;;  %2491 = vcosq.f32 %v1564_v34  ;;  %v1718_v23 = vsel %vm1714_vm5, %v1698_v48, %v1701_v40 }
 0x1c8   : > { %v1720_v56 = vsel %vm1716_vm6, %v1704_v32, %v1719_v43  ;;  %v1729_v53 = vsel %vm1715_vm7, %v1726_v35, %v1728_v15  ;;  %2493 = vsinq.f32 %v1564_v34  ;;  %v2349_v28 = vadd.s32 4294967294, %v1647_v8 }
 0x1c9   : > { %v4173_v55 = vmul.u32.u64.low %v1730_v5, %v1729_v53  ;;  %v4174_v21 = vmul.u32.u64.high %v1730_v5, %v1729_v53, %v4173_v55  ;;  %v4180_v11 = vand.u32 3, %v1565_v16  ;;  %vm1581_vm8 = vcmp.lt.s32.totalorder %v4782_v52, 0 }
 0x1ca   : > { %v4183_v48 = vmul.u32.u64.low %v1730_v5, %v1725_v24  ;;  %v4184_v40 = vmul.u32.u64.high %v1730_v5, %v1725_v24, %v4183_v48  ;;  %vm2350_vm9 = vcmp.lt.s32.totalorder %v2349_v28, 0  ;;  %v4189_v32 = vsel %vm1581_vm8, %v1665_v13, %v1641_v10 }
 0x1cb   : > { %v1721_v19 = vsel %vm1715_vm7, %v1718_v23, %v1720_v56  ;;  %v1785_v17 = vand.u32 2147483647, %v4787_v49  ;;  %v1800_v54 = vsub.s32 32, %v3951_v9  ;;  %v4196_v16 = vadd.s32 1, %v3956_v4 }
 0x1cc   : > { %v4199_v41 = vand.u32 31, %v4101_v6  ;;  %v1650_v45 = vsel %vm2350_vm9, 0, %v2349_v28  ;;  %vm4203_vm10 = vcmp.le.f32.partialorder %v1579_v26, 0.7853982  ;;  %v1635_v59 = vadd.s32 %v4055_v42, %v4068_v3 }
 0x1cd   : > { %v1651_v10 = vsub.s32 32, %v1650_v45  ;;  %v1655_v38 = vsub.s32 4294967266, %v1650_v45  ;;  %v1668_v4 = vsel %vm4203_vm10, 0, %v4189_v32  ;;  %v1737_v44 = vmul.u32 %v1730_v5, %v1721_v19 }
 0x1ce   : > { %vm1739_vm11 = vc.u32 %v4174_v21, %v4183_v48  ;;  %v1740_v39 = vadd.s32 1, %v4184_v40  ;;  %vm1574_vm12 = vcmp.eq.s32.totalorder %v4180_v11, 2  ;;  %v1652_v26 = vshll.u32 %v4132_v33, %v1650_v45 }
 0x1cf   : > { %v1653_v61 = vshrl.u32 %v1635_v59, %v1651_v10  ;;  %v1656_v7 = vadd.s32 127, %v1655_v38  ;;  %v4219_v42 = vand.u32 8388607, %v1785_v17  ;;  %vm1571_vm13 = vcmp.eq.s32.totalorder %v4180_v11, 0 }
 0x1d0   : > { %v1741_v3 = vsel %vm1739_vm11, %v1740_v39, %v4184_v40  ;;  %v1803_v14 = vshrl.u32 %v4754_v51, %v1800_v54  ;;  %v1809_v57 = vshrl.u32 %v4742_v25, %v1800_v54  ;;  %v1812_v30 = vshrl.u32 %v4743_v1, %v1800_v54 }
 0x1d1   : > { %vm1570_vm14 = vcmp.lt.s32.totalorder %v4180_v11, 2  ;;  %v1654_v62 = vor.u32 %v1653_v61, %v1652_v26  ;;  %v1657_v33 = vshll.u32 %v1656_v7, 23  ;;  %v1742_v20 = vadd.s32 %v1741_v3, %v1737_v44 }
 0x1d2   : > { %v1811_v31 = vshll.u32 %v4742_v25, %v3951_v9  ;;  %vm1568_vm15 = vweird.f32 %v4779_v47  ;;  %v1801_v13 = vshrl.u32 %v4752_v29, %v1800_v54  ;;  %v1802_v63 = vshll.u32 %v4752_v29, %v3951_v9 }
 0x1d3   : > { %v1806_v58 = vshrl.u32 %v4748_v60, %v1800_v54  ;;  %v1815_v43 = vshrl.u32 %v4744_v46, %v1800_v54  ;;  %vm2002_vm0 = vcmp.gt.s32.totalorder %v4196_v16, 0  ;;  %v1658_v35 = vor.u32 4788187, %v1657_v33 }
 0x1d4   : > { %v1743_v2 = vadd.s32 536870912, %v1742_v20  ;;  %v1808_v50 = vshll.u32 %v4748_v60, %v3951_v9  ;;  %v1813_v24 = vor.u32 %v1812_v30, %v1811_v31  ;;  %v1793_v22 = vor.u32 8388608, %v4219_v42  ;;  %v2492_v5 = vpop.eup %2491 }
 0x1d5   : > { %v1804_v34 = vor.u32 %v1803_v14, %v1802_v63  ;;  %v1805_v8 = vshll.u32 %v4754_v51, %v3951_v9  ;;  %v1814_v15 = vshll.u32 %v4743_v1, %v3951_v9  ;;  %v1659_v23 = vand.u32 2147483647, %v1658_v35  ;;  %v2494_v55 = vpop.eup %2493 }
 0x1d6   : > { %v1661_v56 = vcvt.s32.f32 %v1654_v62  ;;  %v4243_v53 = vshrl.u32 %v1743_v2, 30  ;;  %v1810_v28 = vor.u32 %v1809_v57, %v1808_v50  ;;  %v1575_v40 = vxor.u32 2147483648, %v2492_v5 }
 0x1d7   : > { %v1807_v19 = vor.u32 %v1806_v58, %v1805_v8  ;;  %v1816_v54 = vor.u32 %v1815_v43, %v1814_v15  ;;  %vm1820_vm1 = vcmp.lt.s32.totalorder %v3948_v12, 4  ;;  %v1572_v45 = vxor.u32 2147483648, %v2494_v55 }
 0x1d8   : > { %v1662_v59 = vmul.f32 %v1661_v56, %v1659_v23  ;;  %v1745_v10 = vshll.u32 %v4243_v53, 30  ;;  %v1826_v38 = vsel %vm1820_vm1, %v1813_v24, 920167782  ;;  %v1576_v9 = vsel %vm1574_vm12, %v1575_v40, %v2494_v55 }
 0x1d9   : > { %vm1817_vm2 = vcmp.lt.s32.totalorder %v3948_v12, 1  ;;  %vm1818_vm3 = vcmp.lt.s32.totalorder %v3948_v12, 2  ;;  %vm1819_vm4 = vcmp.lt.s32.totalorder %v3948_v12, 3  ;;  %v1573_v44 = vsel %vm1571_vm13, %v2492_v5, %v1572_v45 }
 0x1da   : > { %v1663_v39 = vxor.u32 2147483648, %v1662_v59  ;;  %v4256_v26 = vsub.s32 %v1742_v20, %v1745_v10  ;;  %v1822_v61 = vsel %vm1820_vm1, %v1810_v28, 2102212464  ;;  %v1577_v7 = vsel %vm1570_vm14, %v1573_v44, %v1576_v9 }
 0x1db   : > { %v1825_v42 = vsel %vm1817_vm2, %v1804_v34, %v1807_v19  ;;  %v1827_v3 = vsel %vm1819_vm4, %v1810_v28, %v1826_v38  ;;  %v1830_v14 = vsel %vm1820_vm1, %v1816_v54, 1326507024  ;;  %v1578_v57 = vsel %vm1568_vm15, nan, %v1577_v7 }
 0x1dc   : > { %v1664_v30 = vsel %vm1581_vm8, %v1663_v39, %v1662_v59  ;;  %v1748_v62 = vsub.s32 0, %v4256_v26  ;;  %v1829_v11 = vsel %vm1817_vm2, %v1807_v19, %v1810_v28  ;;  %2163 = vrot.lane.b32.xlu0 %v1578_v57, %s2530_s7  ;;  %v1821_v20 = vsel %vm1817_vm2, %v1801_v13, %v1804_v34 }
 0x1dd   : > { %v1667_v33 = vsel %vm4203_vm10, %v4782_v52, %v1664_v30  ;;  %v1823_v47 = vsel %vm1819_vm4, %v1807_v19, %v1822_v61  ;;  %v1831_v31 = vsel %vm1819_vm4, %v1813_v24, %v1830_v14  ;;  %v1828_v58 = vsel %vm1818_vm3, %v1825_v42, %v1827_v3 }
 0x1de   : > { %2495 = vcosq.f32 %v1667_v33  ;;  %v2352_v63 = vmin.u32 %v1748_v62, %v4256_v26  ;;  %v1833_v43 = vshll.u32 %v1793_v22, 8  ;;  %v4291_v35 = vsel %vm2002_vm0, %v4196_v16, 0 }
 0x1df   : > { %v4294_v13 = vsub.s32 32, %v4199_v41  ;;  %2497 = vsinq.f32 %v1667_v33  ;;  %v1832_v2 = vsel %vm1818_vm3, %v1829_v11, %v1831_v31  ;;  %v1888_v8 = vand.u32 2147483647, %v4774_v27 }
 0x1e0   : > { %v1750_v50 = vclz %v2352_v63  ;;  %v4298_v24 = vmul.u32.u64.low %v1833_v43, %v1832_v2  ;;  %v4299_v34 = vmul.u32.u64.high %v1833_v43, %v1832_v2, %v4298_v24  ;;  %v4306_v22 = vand.u32 3, %v1668_v4 }
 0x1e1   : > { %v1824_v16 = vsel %vm1818_vm3, %v1821_v20, %v1823_v47  ;;  %v4310_v15 = vmul.u32.u64.low %v1833_v43, %v1828_v58  ;;  %v4311_v5 = vmul.u32.u64.high %v1833_v43, %v1828_v58, %v4310_v15  ;;  %v4315_v56 = vand.u32 31, %v4291_v35 }
 0x1e2   : > { %v2353_v23 = vadd.s32 4294967294, %v1750_v50  ;;  %v4318_v28 = vshrl.u32 %v4101_v6, 5  ;;  %v1738_v37 = vadd.s32 %v4183_v48, %v4174_v21  ;;  %v1768_v32 = vsub.s32 4, %v4243_v53 }
 0x1e3   : > { %v1840_v4 = vmul.u32 %v1833_v43, %v1824_v16  ;;  %vm1842_vm6 = vc.u32 %v4299_v34, %v4310_v15  ;;  %v4327_v12 = vand.u32 8388607, %v1888_v8  ;;  %vm1677_vm7 = vcmp.eq.s32.totalorder %v4306_v22, 2 }
 0x1e4   : > { %vm2354_vm5 = vcmp.lt.s32.totalorder %v2353_v23, 0  ;;  %v1843_v6 = vadd.s32 1, %v4311_v5  ;;  %v1905_v40 = vshll.u32 %v4752_v29, %v4199_v41  ;;  %v1906_v21 = vshrl.u32 %v4754_v51, %v4294_v13 }
 0x1e5   : > { %v1753_v55 = vsel %vm2354_vm5, 0, %v2353_v23  ;;  %vm1674_vm8 = vcmp.eq.s32.totalorder %v4306_v22, 0  ;;  %v1908_v54 = vshll.u32 %v4754_v51, %v4199_v41  ;;  %v1909_v45 = vshrl.u32 %v4748_v60, %v4294_v13 }
 0x1e6   : > { %v1754_v48 = vsub.s32 32, %v1753_v55  ;;  %v1758_v19 = vsub.s32 4294967266, %v1753_v55  ;;  %vm1673_vm9 = vcmp.lt.s32.totalorder %v4306_v22, 2  ;;  %v1844_v59 = vsel %vm1842_vm6, %v1843_v6, %v4311_v5 }
 0x1e7   : > { %v1912_v10 = vshrl.u32 %v4742_v25, %v4294_v13  ;;  %v1914_v38 = vshll.u32 %v4742_v25, %v4199_v41  ;;  %v1915_v9 = vshrl.u32 %v4743_v1, %v4294_v13  ;;  %vm1671_vm10 = vweird.f32 %v4782_v52 }
 0x1e8   : > { %vm1684_vm11 = vcmp.lt.s32.totalorder %v2690_v0, 0  ;;  %v1755_v44 = vshll.u32 %v4256_v26, %v1753_v55  ;;  %v1756_v39 = vshrl.u32 %v1738_v37, %v1754_v48  ;;  %v1759_v61 = vadd.s32 127, %v1758_v19 }
 0x1e9   : > { %v1845_v7 = vadd.s32 %v1844_v59, %v1840_v4  ;;  %v1911_v42 = vshll.u32 %v4748_v60, %v4199_v41  ;;  %v1916_v3 = vor.u32 %v1915_v9, %v1914_v38  ;;  %v1917_v14 = vshll.u32 %v4743_v1, %v4199_v41 }
 0x1ea   : > { %v1918_v57 = vshrl.u32 %v4744_v46, %v4294_v13  ;;  %v1757_v30 = vor.u32 %v1756_v39, %v1755_v44  ;;  %v1760_v62 = vshll.u32 %v1759_v61, 23  ;;  %v1896_v33 = vor.u32 8388608, %v4327_v12 }
 0x1eb   : > { %v1846_v11 = vadd.s32 536870912, %v1845_v7  ;;  %v2496_v20 = vpop.eup %2495  ;;  %v1907_v26 = vor.u32 %v1906_v21, %v1905_v40  ;;  %v1910_v47 = vor.u32 %v1909_v45, %v1908_v54  ;;  %v1913_v31 = vor.u32 %v1912_v10, %v1911_v42 }
 0x1ec   : > { %v1919_v63 = vor.u32 %v1918_v57, %v1917_v14  ;;  %v2498_v58 = vpop.eup %2497  ;;  %v1678_v43 = vxor.u32 2147483648, %v2496_v20  ;;  %v1761_v2 = vor.u32 4788187, %v1760_v62  ;;  %vm1923_vm12 = vcmp.lt.s32.totalorder %v4318_v28, 4 }
 0x1ed   : > { %v4358_v50 = vshrl.u32 %v1846_v11, 30  ;;  %v1675_v41 = vxor.u32 2147483648, %v2498_v58  ;;  %vm1920_vm13 = vcmp.lt.s32.totalorder %v4318_v28, 1  ;;  %vm1922_vm14 = vcmp.lt.s32.totalorder %v4318_v28, 3 }
 0x1ee   : > { %v1929_v24 = vsel %vm1923_vm12, %v1916_v3, 920167782  ;;  %v1679_v16 = vsel %vm1677_vm7, %v1678_v43, %v2498_v58  ;;  %v1762_v5 = vand.u32 2147483647, %v1761_v2  ;;  %v1764_v23 = vcvt.s32.f32 %v1757_v30  ;;  %v4439_v58 = vpop.permute.xlu0 %2143 }
 0x1ef   : > { %v1848_v37 = vshll.u32 %v4358_v50, 30  ;;  %v1676_v4 = vsel %vm1674_vm8, %v2496_v20, %v1675_v41  ;;  %v1928_v12 = vsel %vm1920_vm13, %v1907_v26, %v1910_v47  ;;  %v1932_v55 = vsel %vm1920_vm13, %v1910_v47, %v1913_v31 }
 0x1f0   : > { %v1933_v6 = vsel %vm1923_vm12, %v1919_v63, 1326507024  ;;  %v1680_v40 = vsel %vm1673_vm9, %v1676_v4, %v1679_v16  ;;  %v1765_v21 = vmul.f32 %v1764_v23, %v1762_v5  ;;  %v1930_v19 = vsel %vm1922_vm14, %v1913_v31, %v1929_v24  ;;  %v4447_v24 = vpop.permute.xlu1 %2145 }
 0x1f1   : > { %v4378_v48 = vsub.s32 %v1845_v7, %v1848_v37  ;;  %v1681_v54 = vsel %vm1671_vm10, nan, %v1680_v40  ;;  %v1769_v45 = vsel %vm1684_vm11, %v1768_v32, %v4243_v53  ;;  %v1904_v59 = vshrl.u32 %v4752_v29, %v4294_v13 }
 0x1f2   : > { %vm1921_vm15 = vcmp.lt.s32.totalorder %v4318_v28, 2  ;;  %2165 = vrot.lane.b32.xlu1 %v1681_v54, %s2530_s7  ;;  %v1766_v22 = vxor.u32 2147483648, %v1765_v21  ;;  %v1925_v52 = vsel %vm1923_vm12, %v1913_v31, 2102212464  ;;  %v1934_v38 = vsel %vm1922_vm14, %v1916_v3, %v1933_v6 }
 0x1f3   : > { %v1851_v10 = vsub.s32 0, %v4378_v48  ;;  %vm4400_vm0 = vcmp.le.f32.partialorder %v1682_v36, 0.7853982  ;;  %v1931_v13 = vsel %vm1921_vm15, %v1928_v12, %v1930_v19  ;;  %v1935_v32 = vsel %vm1921_vm15, %v1932_v55, %v1934_v38 }
 0x1f4   : > { %v1936_v9 = vshll.u32 %v1896_v33, 8  ;;  %v1767_v44 = vsel %vm1684_vm11, %v1766_v22, %v1765_v21  ;;  %v1771_v39 = vsel %vm4400_vm0, 0, %v1769_v45  ;;  %v1924_v36 = vsel %vm1920_vm13, %v1904_v59, %v1907_v26 }
 0x1f5   : > { %v2356_v61 = vmin.u32 %v1851_v10, %v4378_v48  ;;  %v1770_v7 = vsel %vm4400_vm0, %v2690_v0, %v1767_v44  ;;  %v1926_v42 = vsel %vm1922_vm14, %v1910_v47, %v1925_v52  ;;  %v1991_v11 = vand.u32 2147483647, %v4775_v18  ;;  %v4468_v10 = vpop.permute.xlu0 %2147 }
 0x1f6   : > { %v4420_v3 = vmul.u32.u64.low %v1936_v9, %v1935_v32  ;;  %v4421_v14 = vmul.u32.u64.high %v1936_v9, %v1935_v32, %v4420_v3  ;;  %2499 = vcosq.f32 %v1770_v7  ;;  %v2006_v33 = vsub.s32 32, %v4315_v56 }
 0x1f7   : > { %v1853_v57 = vclz %v2356_v61  ;;  %v4423_v30 = vmul.u32.u64.low %v1936_v9, %v1931_v13  ;;  %v4424_v62 = vmul.u32.u64.high %v1936_v9, %v1931_v13, %v4423_v30  ;;  %2501 = vsinq.f32 %v1770_v7 }
 0x1f8   : > { %v1927_v26 = vsel %vm1921_vm15, %v1924_v36, %v1926_v42  ;;  %v4431_v31 = vand.u32 3, %v1771_v39  ;;  %v4436_v47 = vshrl.u32 %v4291_v35, 5  ;;  %v1841_v43 = vadd.s32 %v4310_v15, %v4299_v34 }
 0x1f9   : > { %v2357_v20 = vadd.s32 4294967294, %v1853_v57  ;;  %vm1945_vm1 = vc.u32 %v4421_v14, %v4423_v30  ;;  %v1946_v63 = vadd.s32 1, %v4424_v62  ;;  %v1943_v41 = vmul.u32 %v1936_v9, %v1927_v26 }
 0x1fa   : > { %v4445_v28 = vand.u32 8388607, %v1991_v11  ;;  %v2009_v23 = vshrl.u32 %v4754_v51, %v2006_v33  ;;  %vm1780_vm3 = vcmp.eq.s32.totalorder %v4431_v31, 2  ;;  %v2012_v34 = vshrl.u32 %v4748_v60, %v2006_v33 }
 0x1fb   : > { %vm2358_vm2 = vcmp.lt.s32.totalorder %v2357_v20, 0  ;;  %v1947_v35 = vsel %vm1945_vm1, %v1946_v63, %v4424_v62  ;;  %v2015_v15 = vshrl.u32 %v4742_v25, %v2006_v33  ;;  %vm1777_vm4 = vcmp.eq.s32.totalorder %v4431_v31, 0  ;;  %v4507_v63 = vpop.permute.xlu0 %2151 }
 0x1fc   : > { %v1856_v2 = vsel %vm2358_vm2, 0, %v2357_v20  ;;  %v1948_v4 = vadd.s32 %v1947_v35, %v1943_v41  ;;  %v2017_v6 = vshll.u32 %v4742_v25, %v4315_v56  ;;  %v2018_v40 = vshrl.u32 %v4743_v1, %v2006_v33 }
 0x1fd   : > { %v1857_v16 = vsub.s32 32, %v1856_v2  ;;  %v1861_v5 = vsub.s32 4294967266, %v1856_v2  ;;  %v1858_v37 = vshll.u32 %v4378_v48, %v1856_v2  ;;  %vm1776_vm5 = vcmp.lt.s32.totalorder %v4431_v31, 2  ;;  %v2094_v31 = vld [vmem:[%s4505_s10] sm:$0xff] }
 0x1fe   : > { %v1949_v21 = vadd.s32 536870912, %v1948_v4  ;;  %v2008_v48 = vshll.u32 %v4752_v29, %v4315_v56  ;;  %v2014_v19 = vshll.u32 %v4748_v60, %v4315_v56  ;;  %v2021_v54 = vshrl.u32 %v4744_v46, %v2006_v33  ;;  %v4476_v60 = vpop.permute.xlu1 %2149 }
 0x1ff   : > { %v1859_v12 = vshrl.u32 %v1841_v43, %v1857_v16  ;;  %v1862_v55 = vadd.s32 127, %v1861_v5  ;;  %vm1774_vm6 = vweird.f32 %v2690_v0  ;;  %v2011_v25 = vshll.u32 %v4754_v51, %v4315_v56  ;;  %v2099_v0 = vld [vmem:[%s4505_s10 + $0x28] sm:$0xff] }
 0x200   : > { %v2019_v22 = vor.u32 %v2018_v40, %v2017_v6  ;;  %vm1787_vm7 = vcmp.lt.s32.totalorder %v4787_v49, 0  ;;  %v4471_v52 = vshrl.u32 %v1949_v21, 30  ;;  %v2007_v38 = vshrl.u32 %v4752_v29, %v2006_v33  ;;  %v2097_v6 = vld [vmem:[%s4505_s10 + $0x18] sm:$0xff]  ;;  %v2098_v40 = vld [vmem:[%s4505_s10 + $0x20] sm:$0xff]  ;;  %v2100_v21 = vld [vmem:[%s4505_s10 + $0x30] sm:$0xff] }
 0x201   : > { %v1860_v45 = vor.u32 %v1859_v12, %v1858_v37  ;;  %v1863_v59 = vshll.u32 %v1862_v55, 23  ;;  %v2016_v53 = vor.u32 %v2015_v15, %v2014_v19  ;;  %v2020_v46 = vshll.u32 %v4743_v1, %v4315_v56  ;;  %v2095_v12 = vld [vmem:[%s4505_s10 + $0x8] sm:$0xff]  ;;  %v2096_v55 = vld [vmem:[%s4505_s10 + $0x10] sm:$0xff] }
 0x202   : > { %vm4480_vm8 = vcmp.le.f32.partialorder %v1785_v17, 0.7853982  ;;  %v2010_v32 = vor.u32 %v2009_v23, %v2008_v48  ;;  %v2013_v9 = vor.u32 %v2012_v34, %v2011_v25  ;;  %vm2026_vm9 = vcmp.lt.s32.totalorder %v4436_v47, 4  ;;  %v4516_v16 = vpop.permute.xlu1 %2153  ;;  %v2102_v25 = vld [vmem:[%s4505_s10 + $0x40] sm:$0xff] }
 0x203   : > { %v1864_v51 = vor.u32 4788187, %v1863_v59  ;;  %v2500_v44 = vpop.eup %2499  ;;  %v1951_v29 = vshll.u32 %v4471_v52, 30  ;;  %v1999_v39 = vor.u32 8388608, %v4445_v28  ;;  %v2022_v1 = vor.u32 %v2021_v54, %v2020_v46  ;;  %v2101_v59 = vld [vmem:[%s4505_s10 + $0x38] sm:$0xff] }
 0x204   : > { %v2032_v56 = vsel %vm2026_vm9, %v2019_v22, 920167782  ;;  %v2502_v61 = vpop.eup %2501  ;;  %v1781_v17 = vxor.u32 2147483648, %v2500_v44  ;;  %v1867_v7 = vcvt.s32.f32 %v1860_v45  ;;  %vm2023_vm10 = vcmp.lt.s32.totalorder %v4436_v47, 1 }
 0x205   : > { %v1865_v36 = vand.u32 2147483647, %v1864_v51  ;;  %v1778_v42 = vxor.u32 2147483648, %v2502_v61  ;;  %v4490_v3 = vsub.s32 %v1948_v4, %v1951_v29  ;;  %vm2025_vm11 = vcmp.lt.s32.totalorder %v4436_v47, 3 }
 0x206   : > { %v2028_v57 = vsel %vm2026_vm9, %v2016_v53, 2102212464  ;;  %v1782_v62 = vsel %vm1780_vm3, %v1781_v17, %v2502_v61  ;;  %v2031_v20 = vsel %vm2023_vm10, %v2010_v32, %v2013_v9  ;;  %v2033_v26 = vsel %vm2025_vm11, %v2016_v53, %v2032_v56  ;;  %v2156_v56 = vpop.permute.xlu0 %2155 }
 0x207   : > { %v1868_v33 = vmul.f32 %v1867_v7, %v1865_v36  ;;  %v1779_v43 = vsel %vm1777_vm4, %v2500_v44, %v1778_v42  ;;  %v1954_v2 = vsub.s32 0, %v4490_v3  ;;  %v2035_v41 = vsel %vm2023_vm10, %v2013_v9, %v2016_v53 }
 0x208   : > { %v2036_v28 = vsel %vm2026_vm9, %v2022_v1, 1326507024  ;;  %v1783_v5 = vsel %vm1776_vm5, %v1779_v43, %v1782_v62  ;;  %vm2024_vm12 = vcmp.lt.s32.totalorder %v4436_v47, 2  ;;  %v4528_v15 = vshll.u32 %v1999_v39, 8  ;;  %v2107_v62 = vld [vmem:[%s4505_s10 + $0x68] sm:$0xff] }
 0x209   : > { %v1869_v35 = vxor.u32 2147483648, %v1868_v33  ;;  %v2037_v23 = vsel %vm2025_vm11, %v2019_v22, %v2036_v28  ;;  %v1784_v37 = vsel %vm1774_vm6, nan, %v1783_v5  ;;  %v2360_v4 = vmin.u32 %v1954_v2, %v4490_v3  ;;  %v2103_v22 = vld [vmem:[%s4505_s10 + $0x48] sm:$0xff]  ;;  %v2158_v17 = vpop.permute.xlu1 %2157 }
 0x20a   : > { %v2034_v34 = vsel %vm2024_vm12, %v2031_v20, %v2033_v26  ;;  %2167 = vrot.lane.b32.xlu0 %v1784_v37, %s2530_s7  ;;  %v2027_v19 = vsel %vm2023_vm10, %v2007_v38, %v2010_v32  ;;  %v2029_v54 = vsel %vm2025_vm11, %v2013_v9, %v2028_v57  ;;  %v2038_v45 = vsel %vm2024_vm12, %v2035_v41, %v2037_v23  ;;  %v2104_v38 = vld [vmem:[%s4505_s10 + $0x50] sm:$0xff]  ;;  %v2105_v32 = vld [vmem:[%s4505_s10 + $0x58] sm:$0xff]  ;;  %v2106_v9 = vld [vmem:[%s4505_s10 + $0x60] sm:$0xff] }
 0x20b   : > { %v1870_v48 = vsel %vm1787_vm7, %v1869_v35, %v1868_v33  ;;  %v1956_v46 = vclz %v2360_v4  ;;  %v4553_v51 = vmul.u32.u64.low %v4528_v15, %v2038_v45  ;;  %v4554_v44 = vmul.u32.u64.high %v4528_v15, %v2038_v45, %v4553_v51 }
 0x20c   : > { %v1873_v53 = vsel %vm4480_vm8, %v4787_v49, %v1870_v48  ;;  %v1871_v29 = vsub.s32 4, %v4358_v50  ;;  %v4567_v39 = vmul.u32.u64.low %v4528_v15, %v2034_v34  ;;  %v4568_v1 = vmul.u32.u64.high %v4528_v15, %v2034_v34, %v4567_v39  ;;  %v2108_v51 = vld [vmem:[%s4505_s10 + $0x70] sm:$0xff] }
 0x20d   : > { %2503 = vcosq.f32 %v1873_v53  ;;  %v2361_v61 = vadd.s32 4294967294, %v1956_v46  ;;  %vm2110_vm13 = vcmask 130048   ;;  %vm2191_vm14 = vcmask 261248  }
 0x20e   : > { %2505 = vsinq.f32 %v1873_v53  ;;  %v2030_v36 = vsel %vm2024_vm12, %v2027_v19, %v2029_v54  ;;  %2111 = vst.msk [vmem:[%s4560_s13] sm:$0xff] %vm2110_vm13, %v2094_v31  ;;  %2112 = vst.msk [vmem:[%s4560_s13 + $0x8] sm:$0xff] %vm2110_vm13, %v2095_v12  ;;  %vm2048_vm0 = vc.u32 %v4554_v44, %v4567_v39  ;;  %v1872_v47 = vsel %vm1787_vm7, %v1871_v29, %v4358_v50 }
 0x20f   : > { %2113 = vst.msk [vmem:[%s4560_s13 + $0x10] sm:$0xff] %vm2110_vm13, %v2096_v55  ;;  %2114 = vst.msk [vmem:[%s4560_s13 + $0x18] sm:$0xff] %vm2110_vm13, %v2097_v6  ;;  %vm2362_vm15 = vcmp.lt.s32.totalorder %v2361_v61, 0  ;;  %v2046_v42 = vmul.u32 %v4528_v15, %v2030_v36  ;;  %vm1877_vm4 = vweird.f32 %v4787_v49  ;;  %vm1890_vm5 = vcmp.lt.s32.totalorder %v4774_v27, 0 }
 0x210   : > { %2115 = vst.msk [vmem:[%s4560_s13 + $0x20] sm:$0xff] %vm2110_vm13, %v2098_v40  ;;  %2116 = vst.msk [vmem:[%s4560_s13 + $0x28] sm:$0xff] %vm2110_vm13, %v2099_v0  ;;  %vm4647_vm6 = vcmp.le.f32.partialorder %v1888_v8, 0.7853982  ;;  %v1974_v54 = vsub.s32 4, %v4471_v52  ;;  %vm1980_vm11 = vweird.f32 %v4774_v27  ;;  %vm1993_vm12 = vcmp.lt.s32.totalorder %v4775_v18, 0 }
 0x211   : > { %2117 = vst.msk [vmem:[%s4560_s13 + $0x30] sm:$0xff] %vm2110_vm13, %v2100_v21  ;;  %2118 = vst.msk [vmem:[%s4560_s13 + $0x38] sm:$0xff] %vm2110_vm13, %v2101_v59 }
 0x212   : > { %2119 = vst.msk [vmem:[%s4560_s13 + $0x40] sm:$0xff] %vm2110_vm13, %v2102_v25  ;;  %2120 = vst.msk [vmem:[%s4560_s13 + $0x48] sm:$0xff] %vm2110_vm13, %v2103_v22  ;;  %v1975_v59 = vsel %vm1890_vm5, %v1974_v54, %v4471_v52  ;;  %v2047_v22 = vadd.s32 %v4567_v39, %v4554_v44 }
 0x213   : > { %2121 = vst.msk [vmem:[%s4560_s13 + $0x50] sm:$0xff] %vm2110_vm13, %v2104_v38  ;;  %2122 = vst.msk [vmem:[%s4560_s13 + $0x58] sm:$0xff] %vm2110_vm13, %v2105_v32  ;;  %v1977_v38 = vsel %vm4647_vm6, 0, %v1975_v59 }
 0x214   : > { %2123 = vst.msk [vmem:[%s4560_s13 + $0x60] sm:$0xff] %vm2110_vm13, %v2106_v9  ;;  %2124 = vst.msk [vmem:[%s4560_s13 + $0x68] sm:$0xff] %vm2110_vm13, %v2107_v62 }
 0x215   : > { %2192 = vst.msk [vmem:[%s4560_s13] sm:$0xff] %vm2191_vm14, %v4439_v58  ;;  %2193 = vst.msk [vmem:[%s4560_s13 + $0x8] sm:$0xff] %vm2191_vm14, %v4447_v24  ;;  %v1959_v58 = vsel %vm2362_vm15, 0, %v2361_v61  ;;  %v2049_v24 = vadd.s32 1, %v4568_v1  ;;  %v1981_v61 = vand.u32 3, %v1977_v38 }
 0x216   : > { %2194 = vst.msk [vmem:[%s4560_s13 + $0x10] sm:$0xff] %vm2191_vm14, %v4468_v10  ;;  %2195 = vst.msk [vmem:[%s4560_s13 + $0x18] sm:$0xff] %vm2191_vm14, %v4476_v60  ;;  %v1944_v10 = vadd.s32 %v4423_v30, %v4421_v14  ;;  %v1960_v60 = vsub.s32 32, %v1959_v58  ;;  %v1964_v7 = vsub.s32 4294967266, %v1959_v58  ;;  %v1961_v33 = vshll.u32 %v4490_v3, %v1959_v58 }
 0x217   : > { %2196 = vst.msk [vmem:[%s4560_s13 + $0x20] sm:$0xff] %vm2191_vm14, %v4507_v63  ;;  %2197 = vst.msk [vmem:[%s4560_s13 + $0x28] sm:$0xff] %vm2191_vm14, %v4516_v16  ;;  %v2050_v57 = vsel %vm2048_vm0, %v2049_v24, %v4568_v1  ;;  %v1874_v14 = vsel %vm4480_vm8, 0, %v1872_v47  ;;  %vm1986_vm8 = vcmp.eq.s32.totalorder %v1981_v61, 2  ;;  %vm1983_vm9 = vcmp.eq.s32.totalorder %v1981_v61, 0 }
 0x218   : > { %2198 = vst.msk [vmem:[%s4560_s13 + $0x30] sm:$0xff] %vm2191_vm14, %v2156_v56  ;;  %2199 = vst.msk [vmem:[%s4560_s13 + $0x38] sm:$0xff] %vm2191_vm14, %v2158_v17  ;;  %v1962_v20 = vshrl.u32 %v1944_v10, %v1960_v60  ;;  %v1965_v50 = vadd.s32 127, %v1964_v7  ;;  %v2051_v26 = vadd.s32 %v2050_v57, %v2046_v42  ;;  %v1878_v2 = vand.u32 3, %v1874_v14 }
 0x219   : > { %2125 = vst.msk [vmem:[%s4560_s13 + $0x70] sm:$0xff] %vm2110_vm13, %v2108_v51  ;;  %vm1982_vm10 = vcmp.lt.s32.totalorder %v1981_v61, 2  ;;  %vm1992_vm15 = vcmp.le.f32.partialorder %v1991_v11, 0.7853982 }
 0x21a   : > { %v1963_v30 = vor.u32 %v1962_v20, %v1961_v33  ;;  %v1966_v63 = vshll.u32 %v1965_v50, 23  ;;  %v2052_v43 = vadd.s32 536870912, %v2051_v26  ;;  %v2504_v16 = vpop.eup %2503  ;;  %vm1883_vm1 = vcmp.eq.s32.totalorder %v1878_v2, 2 }
 0x21b   : > { %v2506_v23 = vpop.eup %2505  ;;  %v1884_v37 = vxor.u32 2147483648, %v2504_v16  ;;  %vm1880_vm2 = vcmp.eq.s32.totalorder %v1878_v2, 0  ;;  %vm1879_vm3 = vcmp.lt.s32.totalorder %v1878_v2, 2 }
 0x21c   : > { %v1967_v41 = vor.u32 4788187, %v1966_v63  ;;  %v4640_v28 = vshrl.u32 %v2052_v43, 30  ;;  %v1970_v35 = vcvt.s32.f32 %v1963_v30  ;;  %v1881_v4 = vxor.u32 2147483648, %v2506_v23 }
 0x21d   : > { %v1885_v13 = vsel %vm1883_vm1, %v1884_v37, %v2506_v23 }
 0x21e   : > { %v1968_v5 = vand.u32 2147483647, %v1967_v41  ;;  %v2054_v3 = vshll.u32 %v4640_v28, 30  ;;  %v1882_v31 = vsel %vm1880_vm2, %v2504_v16, %v1881_v4  ;;  %v2077_v20 = vsub.s32 4, %v4640_v28 }
 0x21f   : > { %v1886_v6 = vsel %vm1879_vm3, %v1882_v31, %v1885_v13  ;;  %vm2083_vm3 = vweird.f32 %v4775_v18 }
 0x220   : > { %v1971_v34 = vmul.f32 %v1970_v35, %v1968_v5  ;;  %v2055_v15 = vsub.s32 %v2051_v26, %v2054_v3  ;;  %v1887_v40 = vsel %vm1877_vm4, nan, %v1886_v6  ;;  %v2160_v8 = vpop.permute.xlu0 %2159  ;;  %v2109_v26 = vld [vmem:[%s4505_s10 + $0x78] sm:$0xff] }
 0x221   : > { %2169 = vrot.lane.b32.xlu1 %v1887_v40, %s2530_s7  ;;  %2200 = vst.msk [vmem:[%s4560_s13 + $0x40] sm:$0xff] %vm2191_vm14, %v2160_v8 }
 0x222   : > { %v1972_v12 = vxor.u32 2147483648, %v1971_v34  ;;  %v2057_v55 = vsub.s32 0, %v2055_v15  ;;  %2126 = vst.msk [vmem:[%s4560_s13 + $0x78] sm:$0xff] %vm2110_vm13, %v2109_v26 }
 0x224   : > { %v1973_v21 = vsel %vm1890_vm5, %v1972_v12, %v1971_v34  ;;  %v2364_v48 = vmin.u32 %v2057_v55, %v2055_v15 }
 0x225   : > { %v1976_v49 = vsel %vm4647_vm6, %v4774_v27, %v1973_v21  ;;  %v2078_v27 = vsel %vm1993_vm12, %v2077_v20, %v4640_v28 }
 0x226   : > { %2507 = vcosq.f32 %v1976_v49  ;;  %v2059_v19 = vclz %v2364_v48  ;;  %v2080_v14 = vsel %vm1992_vm15, 0, %v2078_v27 }
 0x227   : > { %2509 = vsinq.f32 %v1976_v49  ;;  %v2084_v30 = vand.u32 3, %v2080_v14 }
 0x228   : > { %v2365_v45 = vadd.s32 4294967294, %v2059_v19 }
 0x229   : > { %vm2089_vm0 = vcmp.eq.s32.totalorder %v2084_v30, 2  ;;  %vm2086_vm1 = vcmp.eq.s32.totalorder %v2084_v30, 0  ;;  %vm2085_vm2 = vcmp.lt.s32.totalorder %v2084_v30, 2 }
 0x22a   : > { %vm2366_vm7 = vcmp.lt.s32.totalorder %v2365_v45, 0 }
 0x22b   : > { %v2062_v25 = vsel %vm2366_vm7, 0, %v2365_v45 }
 0x22c   : > { %v2063_v53 = vsub.s32 32, %v2062_v25  ;;  %v2067_v46 = vsub.s32 4294967266, %v2062_v25  ;;  %v2064_v32 = vshll.u32 %v2055_v15, %v2062_v25 }
 0x22e   : > { %v2065_v9 = vshrl.u32 %v2047_v22, %v2063_v53  ;;  %v2068_v29 = vadd.s32 127, %v2067_v46 }
 0x230   : > { %v2066_v1 = vor.u32 %v2065_v9, %v2064_v32  ;;  %v2069_v56 = vshll.u32 %v2068_v29, 23 }
 0x232   : > { %v2070_v17 = vor.u32 4788187, %v2069_v56  ;;  %v2073_v44 = vcvt.s32.f32 %v2066_v1 }
 0x233   : > { %v2508_v52 = vpop.eup %2507 }
 0x234   : > { %v2510_v36 = vpop.eup %2509  ;;  %v1987_v47 = vxor.u32 2147483648, %v2508_v52  ;;  %v2071_v58 = vand.u32 2147483647, %v2070_v17 }
 0x235   : > { %v1984_v39 = vxor.u32 2147483648, %v2510_v36 }
 0x236   : > { %v1988_v24 = vsel %vm1986_vm8, %v1987_v47, %v2510_v36  ;;  %v2074_v10 = vmul.f32 %v2073_v44, %v2071_v58 }
 0x237   : > { %v1985_v60 = vsel %vm1983_vm9, %v2508_v52, %v1984_v39 }
 0x238   : > { %v1989_v7 = vsel %vm1982_vm10, %v1985_v60, %v1988_v24  ;;  %v2075_v42 = vxor.u32 2147483648, %v2074_v10  ;;  %v2162_v50 = vpop.permute.xlu1 %2161 }
 0x239   : > { %v1990_v57 = vsel %vm1980_vm11, nan, %v1989_v7  ;;  %2201 = vst.msk [vmem:[%s4560_s13 + $0x48] sm:$0xff] %vm2191_vm14, %v2162_v50 }
 0x23a   : > { %2171 = vrot.lane.b32.xlu0 %v1990_v57, %s2530_s7  ;;  %v2076_v62 = vsel %vm1993_vm12, %v2075_v42, %v2074_v10 }
 0x23b   : > { %v2079_v33 = vsel %vm1992_vm15, %v4775_v18, %v2076_v62 }
 0x23c   : > { %2511 = vcosq.f32 %v2079_v33 }
 0x23d   : > { %2513 = vsinq.f32 %v2079_v33 }
 0x249   : > { %v2512_v63 = vpop.eup %2511 }
 0x24a   : > { %v2514_v11 = vpop.eup %2513  ;;  %v2090_v43 = vxor.u32 2147483648, %v2512_v63 }
 0x24b   : > { %v2087_v2 = vxor.u32 2147483648, %v2514_v11 }
 0x24c   : > { %v2091_v41 = vsel %vm2089_vm0, %v2090_v43, %v2514_v11 }
 0x24d   : > { %v2088_v16 = vsel %vm2086_vm1, %v2512_v63, %v2087_v2 }
 0x24e   : > { %v2092_v28 = vsel %vm2085_vm2, %v2088_v16, %v2091_v41  ;;  %v2164_v35 = vpop.permute.xlu0 %2163 }
 0x24f   : > { %v2093_v5 = vsel %vm2083_vm3, nan, %v2092_v28  ;;  %2202 = vst.msk [vmem:[%s4560_s13 + $0x50] sm:$0xff] %vm2191_vm14, %v2164_v35 }
 0x250   : > { %2173 = vrot.lane.b32.xlu1 %v2093_v5, %s2530_s7 }
 0x264   : > { %v2166_v3 = vpop.permute.xlu1 %2165 }
 0x265   : > { %2203 = vst.msk [vmem:[%s4560_s13 + $0x58] sm:$0xff] %vm2191_vm14, %v2166_v3 }
 0x27c   : > { %v2168_v23 = vpop.permute.xlu0 %2167 }
 0x27d   : > { %2204 = vst.msk [vmem:[%s4560_s13 + $0x60] sm:$0xff] %vm2191_vm14, %v2168_v23 }
 0x293   : > { %v2170_v37 = vpop.permute.xlu1 %2169 }
 0x294   : > { %2205 = vst.msk [vmem:[%s4560_s13 + $0x68] sm:$0xff] %vm2191_vm14, %v2170_v37 }
 0x2ac   : > { %v2172_v4 = vpop.permute.xlu0 %2171 }
 0x2ad   : > { %2206 = vst.msk [vmem:[%s4560_s13 + $0x70] sm:$0xff] %vm2191_vm14, %v2172_v4 }
 0x2c2   : > { %v2174_v18 = vpop.permute.xlu1 %2173 }
 0x2c3   : > { %2207 = vst.msk [vmem:[%s4560_s13 + $0x78] sm:$0xff] %vm2191_vm14, %v2174_v18 }
 0x2c4 PF: > { %s15_s18 = sadd.s32 1, %s2521_s18  }
 0x2c5   : > { %p12_p4 = scmp.ge.s32.totalorder %s15_s18, 6  }
 0x2c7   :  { %14 = sbr.rel (!%p12_p4) target bundleno = 1 (0x1), region = 76 }

</bundles_post_ra>
